<compile_context>
chip_gen: v6e
topology: v6e:2x2x1
jax: 0.10.0
libtpu: 0.0.40
codegen_flags: <defaults>
</compile_context>

<pallas_src>
import functools

import jax
import jax.numpy as jnp
from jax.experimental import pallas as pl
from jax.experimental.pallas import tpu as pltpu

_EPS = 1e-5
_LANE = 128
_VMEM_LIMIT = 48 * 1024 * 1024  # <= v7x 64 MiB physical; plenty of headroom v5e/v6e.


def _rup(x, m):
    return ((x + m - 1) // m) * m


def _pad2(x, shape, dtype=jnp.float32):
    x = jnp.asarray(x, jnp.float32)
    out = jnp.zeros(shape, jnp.float32)
    out = out.at[: x.shape[0], : x.shape[1]].set(x)
    return out.astype(dtype)


def _pick_row_tile(n_pad, base, cap=1024):
    """Row tile for the (pure VPU + DMA) norm/act kernel: as big as divides n_pad."""
    if n_pad <= cap:
        return n_pad
    t = base
    while t * 2 <= cap and n_pad % (t * 2) == 0:
        t *= 2
    return t


# ---------------------------------------------------------------------------
# Fused path (small graphs): everything resident in VMEM, one pallas_call.
# ---------------------------------------------------------------------------
def _fused_kernel(a_ref, x_ref,
                  w1r_ref, w1s_ref, b1_ref, g1w_ref, g1b_ref, g1a_ref,
                  w2r_ref, w2s_ref, b2_ref, g2w_ref, g2b_ref, g2a_ref,
                  o_ref, *, n_valid):
    n_pad = a_ref.shape[0]
    inv_n = 1.0 / n_valid
    row = jax.lax.broadcasted_iota(jnp.int32, (n_pad, 1), 0)
    valid = row < n_valid

    a = a_ref[...]        # bf16 [n_pad, n_pad]
    x = x_ref[...]        # bf16 [n_pad, f_in]

    def conv(xb, wr_ref_, ws_ref_, b_ref_):
        # bf16 MXU operands everywhere, f32 accumulation.
        agg = jnp.dot(a, xb, preferred_element_type=jnp.float32)
        h = (jnp.dot(agg.astype(jnp.bfloat16), wr_ref_[...],
                     preferred_element_type=jnp.float32)
             + jnp.dot(xb, ws_ref_[...], preferred_element_type=jnp.float32)
             + b_ref_[...])
        return jnp.where(valid, h, 0.0)   # zero padded rows -> exact norm stats

    def gnorm(h, w_ref_, b_ref_, alpha_ref_):
        # Centered (two-pass) variance, same as the PyG GraphNorm reference.
        mean = jnp.sum(h, axis=0, keepdims=True) * inv_n
        cen = jnp.where(valid, h - alpha_ref_[...] * mean, 0.0)
        var = jnp.sum(cen * cen, axis=0, keepdims=True) * inv_n
        return cen * jax.lax.rsqrt(var + _EPS) * w_ref_[...] + b_ref_[...]

    h1 = conv(x, w1r_ref, w1s_ref, b1_ref)
    y1 = jnp.maximum(gnorm(h1, g1w_ref, g1b_ref, g1a_ref), 0.0)
    h2 = conv(y1.astype(jnp.bfloat16), w2r_ref, w2s_ref, b2_ref)
    o_ref[...] = jax.nn.sigmoid(gnorm(h2, g2w_ref, g2b_ref, g2a_ref))


def _fused_forward(adj_bf16, x_bf16, p, n_valid, n_pad, c_p):
    return pl.pallas_call(
        functools.partial(_fused_kernel, n_valid=n_valid),
        out_shape=jax.ShapeDtypeStruct((n_pad, c_p), jnp.float32),
        compiler_params=pltpu.CompilerParams(vmem_limit_bytes=_VMEM_LIMIT),
    )(adj_bf16, x_bf16,
      p["w1r"], p["w1s"], p["b1"], p["g1w"], p["g1b"], p["g1a"],
      p["w2r"], p["w2s"], p["b2"], p["g2w"], p["g2b"], p["g2a"])


# ---------------------------------------------------------------------------
# Tiled path (large graphs).
# Kernel 1: one GraphConv layer  h = (A @ x) @ W_rel + b + x @ W_root
#           + per-row-tile GraphNorm partial stats (sum, sum of squares).
# grid = (num_row_tiles,); A is a (tile, n_pad) row stripe, x is resident bf16.
# ---------------------------------------------------------------------------
def _graphconv_kernel(a_ref, x_ref, wr_ref, ws_ref, b_ref, h_ref, stats_ref,
                      *, n_valid, tile):
    i = pl.program_id(0)               # top-level only (never inside pl.when)
    start = i * tile

    # Aggregation over the full row stripe: bf16 MXU, f32 accumulation.
    agg = jnp.dot(a_ref[...], x_ref[...], preferred_element_type=jnp.float32)

    # Root term re-uses the same resident bf16 activations (no duplicate f32 stream).
    xi = x_ref[pl.ds(start, tile), :]

    h = (jnp.dot(agg.astype(jnp.bfloat16), wr_ref[...],
                 preferred_element_type=jnp.float32)
         + jnp.dot(xi, ws_ref[...], preferred_element_type=jnp.float32)
         + b_ref[...])

    # Mask padded node rows so the global GraphNorm statistics stay exact.
    row = start + jax.lax.broadcasted_iota(jnp.int32, (tile, 1), 0)
    h = jnp.where(row < n_valid, h, 0.0)
    h_ref[...] = h

    # Partial stats for this row tile: row 0 = sum, row 1 = sum of squares.
    ps = jnp.sum(h, axis=0, keepdims=True)
    psq = jnp.sum(h * h, axis=0, keepdims=True)
    stats_ref[...] = jnp.concatenate(
        [ps, psq, jnp.zeros((6, ps.shape[1]), jnp.float32)], axis=0)


def _graphconv(adj_bf16, x_bf16, w_rel, w_root, bias, *, n_valid, tile):
    # TODO(synk): for very large graphs (A row stripe > VMEM budget) fall back to a
    # K-tiled contraction with an accumulator scratch / block-sparse A.
    n_pad = adj_bf16.shape[0]
    f_in = x_bf16.shape[1]
    f_out = w_rel.shape[1]
    n_i = n_pad // tile

    kernel = functools.partial(_graphconv_kernel, n_valid=n_valid, tile=tile)
    h, stats = pl.pallas_call(
        kernel,
        out_shape=(jax.ShapeDtypeStruct((n_pad, f_out), jnp.float32),
                   jax.ShapeDtypeStruct((n_i * 8, f_out), jnp.float32)),
        grid=(n_i,),
        in_specs=[
            pl.BlockSpec((tile, n_pad), lambda i: (i, 0)),   # A row stripe (bf16)
            pl.BlockSpec((n_pad, f_in), lambda i: (0, 0)),   # x resident (bf16)
            pl.BlockSpec((f_in, f_out), lambda i: (0, 0)),   # W_rel (bf16, resident)
            pl.BlockSpec((f_in, f_out), lambda i: (0, 0)),   # W_root (bf16, resident)
            pl.BlockSpec((1, f_out), lambda i: (0, 0)),      # bias (f32)
        ],
        out_specs=[
            pl.BlockSpec((tile, f_out), lambda i: (i, 0)),   # h (f32)
            pl.BlockSpec((8, f_out), lambda i: (i, 0)),      # partial stats
        ],
        compiler_params=pltpu.CompilerParams(
            dimension_semantics=("parallel",),
            vmem_limit_bytes=_VMEM_LIMIT),
    )(adj_bf16, x_bf16, w_rel, w_root, bias)
    return h, stats


# ---------------------------------------------------------------------------
# Kernel 2: GraphNorm (with precomputed global mean / rstd) + activation.
# relu variant emits only the bf16 activation that feeds the next layer.
# ---------------------------------------------------------------------------
def _norm_act_kernel(h_ref, mean_ref, rstd_ref, w_ref, b_ref, a_ref, o_ref, *, act):
    cen = h_ref[...] - a_ref[...] * mean_ref[...]
    y = cen * rstd_ref[...] * w_ref[...] + b_ref[...]
    if act == "relu":
        o_ref[...] = jnp.maximum(y, 0.0).astype(o_ref.dtype)   # bf16
    else:  # sigmoid
        o_ref[...] = jax.nn.sigmoid(y)


def _norm_act(h, mean, rstd, weight, bias, mean_scale, *, act, row_tile):
    n_pad, f_out = h.shape
    n_i = n_pad // row_tile
    row_spec = pl.BlockSpec((row_tile, f_out), lambda i: (i, 0))
    vec_spec = pl.BlockSpec((1, f_out), lambda i: (0, 0))
    out_dtype = jnp.bfloat16 if act == "relu" else jnp.float32
    return pl.pallas_call(
        functools.partial(_norm_act_kernel, act=act),
        out_shape=jax.ShapeDtypeStruct((n_pad, f_out), out_dtype),
        grid=(n_i,),
        in_specs=[row_spec, vec_spec, vec_spec, vec_spec, vec_spec, vec_spec],
        out_specs=row_spec,
        compiler_params=pltpu.CompilerParams(
            dimension_semantics=("parallel",),
            vmem_limit_bytes=_VMEM_LIMIT),
    )(h, mean, rstd, weight, bias, mean_scale)


def _finalize_stats(stats, n_valid, mean_scale):
    """Tiny global reduce of per-tile partial sums -> (mean, rstd) per feature."""
    # TODO(synk): for very large N switch to compensated / centered accumulation;
    # the E[h^2] - (2a - a^2) mean^2 form can cancel for huge graphs.
    st = stats.reshape(-1, 8, stats.shape[-1])
    s = jnp.sum(st[:, 0, :], axis=0, keepdims=True)
    sq = jnp.sum(st[:, 1, :], axis=0, keepdims=True)
    mean = s / n_valid
    msq = sq / n_valid
    a = mean_scale
    var = jnp.maximum(msq - (2.0 * a - a * a) * mean * mean, 0.0)
    rstd = jax.lax.rsqrt(var + _EPS)
    return mean, rstd


# ---------------------------------------------------------------------------
# Forward pass
# ---------------------------------------------------------------------------
def gcn_dev_forward(inputs, edges, edges_weight, params, *, tile=256,
                    fused_max_nodes=1024):
    """inputs: [N, F_in] f32, edges: [2, E] int32 (row0=src, row1=dst),
    edges_weight: [E] f32."""
    n_nodes, f_in = inputs.shape
    hidden = params["w1_rel"].shape[1]
    n_classes = params["w2_rel"].shape[1]

    f_in_p = _rup(f_in, _LANE)
    h_p = _rup(hidden, _LANE)
    c_p = _rup(n_classes, _LANE)

    use_fused = n_nodes <= fused_max_nodes
    if use_fused:
        n_pad = _rup(n_nodes, _LANE)
    else:
        tile = min(tile, _rup(n_nodes, _LANE))
        n_pad = _rup(n_nodes, tile)
        # Keep >= 2 row tiles so v7x's two TensorCores both get work.
        if n_pad // tile < 2 and n_pad >= 2 * _LANE:
            tile = n_pad // 2

    # Dense adjacency A[dst, src] = w (PyG source_to_target flow), bf16 for MXU.
    # TODO(synk): for large sparse graphs build block-sparse A and skip empty blocks
    # via scalar-prefetched nonzero-column lists instead of this O(N^2) dense build.
    adj = jnp.zeros((n_pad, n_pad), jnp.float32).at[edges[1], edges[0]].add(
        edges_weight.astype(jnp.float32))
    adj_bf16 = adj.astype(jnp.bfloat16)

    x_bf16 = _pad2(inputs, (n_pad, f_in_p), jnp.bfloat16)

    p = dict(
        w1r=_pad2(params["w1_rel"], (f_in_p, h_p), jnp.bfloat16),
        w1s=_pad2(params["w1_root"], (f_in_p, h_p), jnp.bfloat16),
        b1=_pad2(params["b1"], (1, h_p)),
        g1w=_pad2(params["g1_w"], (1, h_p)),
        g1b=_pad2(params["g1_b"], (1, h_p)),
        g1a=_pad2(params["g1_a"], (1, h_p)),
        w2r=_pad2(params["w2_rel"], (h_p, c_p), jnp.bfloat16),
        w2s=_pad2(params["w2_root"], (h_p, c_p), jnp.bfloat16),
        b2=_pad2(params["b2"], (1, c_p)),
        g2w=_pad2(params["g2_w"], (1, c_p)),
        g2b=_pad2(params["g2_b"], (1, c_p)),
        g2a=_pad2(params["g2_a"], (1, c_p)),
    )

    if use_fused:
        out = _fused_forward(adj_bf16, x_bf16, p, n_nodes, n_pad, c_p)
        return out[:n_nodes, :n_classes]

    # ---- Tiled path -----------------------------------------------------------
    row_tile = _pick_row_tile(n_pad, tile)

    # Layer 1: GraphConv -> GraphNorm -> ReLU
    h1, st1 = _graphconv(adj_bf16, x_bf16, p["w1r"], p["w1s"], p["b1"],
                         n_valid=n_nodes, tile=tile)
    m1, r1 = _finalize_stats(st1, n_nodes, p["g1a"])
    y1_bf16 = _norm_act(h1, m1, r1, p["g1w"], p["g1b"], p["g1a"],
                        act="relu", row_tile=row_tile)

    # Layer 2: GraphConv -> GraphNorm -> Sigmoid (root term from the same bf16 y1)
    h2, st2 = _graphconv(adj_bf16, y1_bf16, p["w2r"], p["w2s"], p["b2"],
                         n_valid=n_nodes, tile=tile)
    m2, r2 = _finalize_stats(st2, n_nodes, p["g2a"])
    out = _norm_act(h2, m2, r2, p["g2w"], p["g2b"], p["g2a"],
                    act="sigmoid", row_tile=row_tile)

    return out[:n_nodes, :n_classes]


# ---------------------------------------------------------------------------
# Parameters / pure-JAX reference
# ---------------------------------------------------------------------------
def init_params(key, in_feats, hidden, n_classes):
    k1, k2, k3, k4 = jax.random.split(key, 4)

    def glorot(k, fan_in, fan_out):
        lim = (6.0 / (fan_in + fan_out)) ** 0.5
        return jax.random.uniform(k, (fan_in, fan_out), jnp.float32, -lim, lim)

    return dict(
        w1_rel=glorot(k1, in_feats, hidden),
        w1_root=glorot(k2, in_feats, hidden),
        b1=jnp.zeros((1, hidden), jnp.float32),
        g1_w=jnp.ones((1, hidden), jnp.float32),
        g1_b=jnp.zeros((1, hidden), jnp.float32),
        g1_a=jnp.ones((1, hidden), jnp.float32),
        w2_rel=glorot(k3, hidden, n_classes),
        w2_root=glorot(k4, hidden, n_classes),
        b2=jnp.zeros((1, n_classes), jnp.float32),
        g2_w=jnp.ones((1, n_classes), jnp.float32),
        g2_b=jnp.zeros((1, n_classes), jnp.float32),
        g2_a=jnp.ones((1, n_classes), jnp.float32),
    )


def _ref_forward(inputs, edges, edges_weight, params):
    n = inputs.shape[0]
    adj = jnp.zeros((n, n), jnp.float32).at[edges[1], edges[0]].add(
        edges_weight.astype(jnp.float32))

    def conv(a, x, wr, ws, b):
        return a @ x @ wr + b + x @ ws

    def gnorm(h, w, b, a):
        mean = jnp.mean(h, axis=0, keepdims=True)
        cen = h - a * mean
        var = jnp.mean(cen * cen, axis=0, keepdims=True)
        return cen * jax.lax.rsqrt(var + _EPS) * w + b

    h = conv(adj, inputs.astype(jnp.float32), params["w1_rel"],
             params["w1_root"], params["b1"])
    h = jnp.maximum(gnorm(h, params["g1_w"], params["g1_b"], params["g1_a"]), 0.0)
    h = conv(adj, h, params["w2_rel"], params["w2_root"], params["b2"])
    h = gnorm(h, params["g2_w"], params["g2_b"], params["g2_a"])
    return jax.nn.sigmoid(h)


if __name__ == "__main__":
    IN_FEATS, HIDDEN, N_CLASSES = 8, 32, 4

    key = jax.random.PRNGKey(0)
    k_x, k_e, k_w, k_p, k_x2, k_e2, k_w2 = jax.random.split(key, 7)
    params = init_params(k_p, IN_FEATS, HIDDEN, N_CLASSES)

    # ---- Test 1: small graph -> fused single-kernel path --------------------
    N, E = 200, 600
    inputs = jax.random.normal(k_x, (N, IN_FEATS), jnp.float32)
    edges = jax.random.randint(k_e, (2, E), 0, N, dtype=jnp.int32)
    edges_weight = jax.random.uniform(k_w, (E,), jnp.float32)

    out = jax.jit(gcn_dev_forward)(inputs, edges, edges_weight, params)
    jax.block_until_ready(out)
    assert out.shape == (N, N_CLASSES)
    assert bool(jnp.all(jnp.isfinite(out)))
    assert bool(jnp.all((out >= 0.0) & (out <= 1.0)))
    ref = _ref_forward(inputs, edges, edges_weight, params)
    # generous tolerance: all MXU operands are bf16 (f32 accumulation)
    assert float(jnp.max(jnp.abs(out - ref))) < 0.1

    # ---- Test 2: larger graph -> tiled (multi-row-tile) pipelined path ------
    N2, E2 = 600, 2000
    inputs2 = jax.random.normal(k_x2, (N2, IN_FEATS), jnp.float32)
    edges2 = jax.random.randint(k_e2, (2, E2), 0, N2, dtype=jnp.int32)
    edges_weight2 = jax.random.uniform(k_w2, (E2,), jnp.float32)

    tiled_fwd = jax.jit(functools.partial(gcn_dev_forward, fused_max_nodes=0))
    out2 = tiled_fwd(inputs2, edges2, edges_weight2, params)
    jax.block_until_ready(out2)
    assert out2.shape == (N2, N_CLASSES)
    assert bool(jnp.all(jnp.isfinite(out2)))
    assert bool(jnp.all((out2 >= 0.0) & (out2 <= 1.0)))
    ref2 = _ref_forward(inputs2, edges2, edges_weight2, params)
    assert float(jnp.max(jnp.abs(out2 - ref2))) < 0.1

    print("KERNEL_OK")
</pallas_src>

<mosaic_0001>
module attributes {stable_mosaic.version = 11 : i64} {
  func.func private @main(%arg0: i32) attributes {dimension_semantics = [#tpu.dimension_semantics<core_parallel>], iteration_bounds = array<i64: 2>, tpu.core_type = #tpu.core_type<sc_scalar_subcore>, window_params = []} {
    return
  }
}

module attributes {stable_mosaic.version = 11 : i64} {
  func.func private @main(%arg0: i32) attributes {dimension_semantics = [#tpu.dimension_semantics<core_parallel>], iteration_bounds = array<i64: 2>, tpu.core_type = #tpu.core_type<sc_scalar_subcore>, window_params = []} {
    return
  }
}

module attributes {stable_mosaic.version = 11 : i64} {
  func.func @_fused_kernel(%arg0: memref<256x256xbf16, #tpu.memory_space<vmem>>, %arg1: memref<256x128xbf16, #tpu.memory_space<vmem>>, %arg2: memref<128x128xbf16, #tpu.memory_space<vmem>>, %arg3: memref<128x128xbf16, #tpu.memory_space<vmem>>, %arg4: memref<1x128xf32, #tpu.memory_space<vmem>>, %arg5: memref<1x128xf32, #tpu.memory_space<vmem>>, %arg6: memref<1x128xf32, #tpu.memory_space<vmem>>, %arg7: memref<1x128xf32, #tpu.memory_space<vmem>>, %arg8: memref<128x128xbf16, #tpu.memory_space<vmem>>, %arg9: memref<128x128xbf16, #tpu.memory_space<vmem>>, %arg10: memref<1x128xf32, #tpu.memory_space<vmem>>, %arg11: memref<1x128xf32, #tpu.memory_space<vmem>>, %arg12: memref<1x128xf32, #tpu.memory_space<vmem>>, %arg13: memref<1x128xf32, #tpu.memory_space<vmem>>, %arg14: memref<256x128xf32, #tpu.memory_space<vmem>>) attributes {dimension_semantics = [], scalar_prefetch = 0 : i64, scratch_operands = 0 : i64, tpu.core_type = #tpu.core_type<tc>} {
    %0 = tpu.iota {dimensions = array<i32: 0>} : vector<256x1xi32>
    %c200_i32 = arith.constant 200 : i32
    %1 = vector.broadcast %c200_i32 : i32 to vector<256x1xi32>
    %2 = arith.cmpi slt, %0, %1 : vector<256x1xi32>
    %c0 = arith.constant 0 : index
    %c0_0 = arith.constant 0 : index
    %3 = vector.load %arg0[%c0, %c0_0] : memref<256x256xbf16, #tpu.memory_space<vmem>>, vector<256x256xbf16>
    %c0_1 = arith.constant 0 : index
    %c0_2 = arith.constant 0 : index
    %4 = vector.load %arg1[%c0_1, %c0_2] : memref<256x128xbf16, #tpu.memory_space<vmem>>, vector<256x128xbf16>
    %cst = arith.constant dense<0.000000e+00> : vector<256x128xf32>
    %5 = tpu.matmul %3, %4, %cst {dimension_numbers = #tpu.dot_dimension_numbers<[1], [0], [0], [1], [0, 0, 1, 1], [], []>} : vector<256x256xbf16>, vector<256x128xbf16>, vector<256x128xf32> -> vector<256x128xf32>
    %6 = arith.truncf %5 : vector<256x128xf32> to vector<256x128xbf16>
    %c0_3 = arith.constant 0 : index
    %c0_4 = arith.constant 0 : index
    %7 = vector.load %arg2[%c0_3, %c0_4] : memref<128x128xbf16, #tpu.memory_space<vmem>>, vector<128x128xbf16>
    %cst_5 = arith.constant dense<0.000000e+00> : vector<256x128xf32>
    %8 = tpu.matmul %6, %7, %cst_5 {dimension_numbers = #tpu.dot_dimension_numbers<[1], [0], [0], [1], [0, 0, 1, 1], [], []>} : vector<256x128xbf16>, vector<128x128xbf16>, vector<256x128xf32> -> vector<256x128xf32>
    %c0_6 = arith.constant 0 : index
    %c0_7 = arith.constant 0 : index
    %9 = vector.load %arg3[%c0_6, %c0_7] : memref<128x128xbf16, #tpu.memory_space<vmem>>, vector<128x128xbf16>
    %cst_8 = arith.constant dense<0.000000e+00> : vector<256x128xf32>
    %10 = tpu.matmul %4, %9, %cst_8 {dimension_numbers = #tpu.dot_dimension_numbers<[1], [0], [0], [1], [0, 0, 1, 1], [], []>} : vector<256x128xbf16>, vector<128x128xbf16>, vector<256x128xf32> -> vector<256x128xf32>
    %11 = arith.addf %8, %10 : vector<256x128xf32>
    %c0_9 = arith.constant 0 : index
    %c0_10 = arith.constant 0 : index
    %12 = vector.load %arg4[%c0_9, %c0_10] : memref<1x128xf32, #tpu.memory_space<vmem>>, vector<1x128xf32>
    %13 = vector.broadcast %12 : vector<1x128xf32> to vector<256x128xf32>
    %14 = arith.addf %11, %13 : vector<256x128xf32>
    %cst_11 = arith.constant 0.000000e+00 : f32
    %15 = vector.shape_cast %2 : vector<256x1xi1> to vector<256x1xi1>
    %16 = vector.broadcast %15 : vector<256x1xi1> to vector<256x128xi1>
    %17 = vector.broadcast %cst_11 : f32 to vector<256x128xf32>
    %18 = arith.select %16, %14, %17 : vector<256x128xi1>, vector<256x128xf32>
    %cst_12 = arith.constant dense<0.000000e+00> : vector<128xf32>
    %19 = vector.multi_reduction <add>, %18, %cst_12 [0] : vector<256x128xf32> to vector<128xf32>
    %20 = vector.shape_cast %19 : vector<128xf32> to vector<1x128xf32>
    %cst_13 = arith.constant 5.000000e-03 : f32
    %21 = vector.broadcast %cst_13 : f32 to vector<1x128xf32>
    %22 = arith.mulf %20, %21 : vector<1x128xf32>
    %c0_14 = arith.constant 0 : index
    %c0_15 = arith.constant 0 : index
    %23 = vector.load %arg7[%c0_14, %c0_15] : memref<1x128xf32, #tpu.memory_space<vmem>>, vector<1x128xf32>
    %24 = arith.mulf %23, %22 : vector<1x128xf32>
    %25 = vector.broadcast %24 : vector<1x128xf32> to vector<256x128xf32>
    %26 = arith.subf %18, %25 : vector<256x128xf32>
    %cst_16 = arith.constant 0.000000e+00 : f32
    %27 = vector.shape_cast %2 : vector<256x1xi1> to vector<256x1xi1>
    %28 = vector.broadcast %27 : vector<256x1xi1> to vector<256x128xi1>
    %29 = vector.broadcast %cst_16 : f32 to vector<256x128xf32>
    %30 = arith.select %28, %26, %29 : vector<256x128xi1>, vector<256x128xf32>
    %31 = arith.mulf %30, %30 : vector<256x128xf32>
    %cst_17 = arith.constant dense<0.000000e+00> : vector<128xf32>
    %32 = vector.multi_reduction <add>, %31, %cst_17 [0] : vector<256x128xf32> to vector<128xf32>
    %33 = vector.shape_cast %32 : vector<128xf32> to vector<1x128xf32>
    %cst_18 = arith.constant 5.000000e-03 : f32
    %34 = vector.broadcast %cst_18 : f32 to vector<1x128xf32>
    %35 = arith.mulf %33, %34 : vector<1x128xf32>
    %cst_19 = arith.constant 9.99999974E-6 : f32
    %36 = vector.broadcast %cst_19 : f32 to vector<1x128xf32>
    %37 = arith.addf %35, %36 : vector<1x128xf32>
    %38 = math.rsqrt %37 : vector<1x128xf32>
    %39 = vector.broadcast %38 : vector<1x128xf32> to vector<256x128xf32>
    %40 = arith.mulf %30, %39 : vector<256x128xf32>
    %c0_20 = arith.constant 0 : index
    %c0_21 = arith.constant 0 : index
    %41 = vector.load %arg5[%c0_20, %c0_21] : memref<1x128xf32, #tpu.memory_space<vmem>>, vector<1x128xf32>
    %42 = vector.broadcast %41 : vector<1x128xf32> to vector<256x128xf32>
    %43 = arith.mulf %40, %42 : vector<256x128xf32>
    %c0_22 = arith.constant 0 : index
    %c0_23 = arith.constant 0 : index
    %44 = vector.load %arg6[%c0_22, %c0_23] : memref<1x128xf32, #tpu.memory_space<vmem>>, vector<1x128xf32>
    %45 = vector.broadcast %44 : vector<1x128xf32> to vector<256x128xf32>
    %46 = arith.addf %43, %45 : vector<256x128xf32>
    %cst_24 = arith.constant 0.000000e+00 : f32
    %47 = vector.broadcast %cst_24 : f32 to vector<256x128xf32>
    %48 = arith.maximumf %46, %47 : vector<256x128xf32>
    %49 = arith.truncf %48 : vector<256x128xf32> to vector<256x128xbf16>
    %cst_25 = arith.constant dense<0.000000e+00> : vector<256x128xf32>
    %50 = tpu.matmul %3, %49, %cst_25 {dimension_numbers = #tpu.dot_dimension_numbers<[1], [0], [0], [1], [0, 0, 1, 1], [], []>} : vector<256x256xbf16>, vector<256x128xbf16>, vector<256x128xf32> -> vector<256x128xf32>
    %51 = arith.truncf %50 : vector<256x128xf32> to vector<256x128xbf16>
    %c0_26 = arith.constant 0 : index
    %c0_27 = arith.constant 0 : index
    %52 = vector.load %arg8[%c0_26, %c0_27] : memref<128x128xbf16, #tpu.memory_space<vmem>>, vector<128x128xbf16>
    %cst_28 = arith.constant dense<0.000000e+00> : vector<256x128xf32>
    %53 = tpu.matmul %51, %52, %cst_28 {dimension_numbers = #tpu.dot_dimension_numbers<[1], [0], [0], [1], [0, 0, 1, 1], [], []>} : vector<256x128xbf16>, vector<128x128xbf16>, vector<256x128xf32> -> vector<256x128xf32>
    %c0_29 = arith.constant 0 : index
    %c0_30 = arith.constant 0 : index
    %54 = vector.load %arg9[%c0_29, %c0_30] : memref<128x128xbf16, #tpu.memory_space<vmem>>, vector<128x128xbf16>
    %cst_31 = arith.constant dense<0.000000e+00> : vector<256x128xf32>
    %55 = tpu.matmul %49, %54, %cst_31 {dimension_numbers = #tpu.dot_dimension_numbers<[1], [0], [0], [1], [0, 0, 1, 1], [], []>} : vector<256x128xbf16>, vector<128x128xbf16>, vector<256x128xf32> -> vector<256x128xf32>
    %56 = arith.addf %53, %55 : vector<256x128xf32>
    %c0_32 = arith.constant 0 : index
    %c0_33 = arith.constant 0 : index
    %57 = vector.load %arg10[%c0_32, %c0_33] : memref<1x128xf32, #tpu.memory_space<vmem>>, vector<1x128xf32>
    %58 = vector.broadcast %57 : vector<1x128xf32> to vector<256x128xf32>
    %59 = arith.addf %56, %58 : vector<256x128xf32>
    %cst_34 = arith.constant 0.000000e+00 : f32
    %60 = vector.shape_cast %2 : vector<256x1xi1> to vector<256x1xi1>
    %61 = vector.broadcast %60 : vector<256x1xi1> to vector<256x128xi1>
    %62 = vector.broadcast %cst_34 : f32 to vector<256x128xf32>
    %63 = arith.select %61, %59, %62 : vector<256x128xi1>, vector<256x128xf32>
    %cst_35 = arith.constant dense<0.000000e+00> : vector<128xf32>
    %64 = vector.multi_reduction <add>, %63, %cst_35 [0] : vector<256x128xf32> to vector<128xf32>
    %65 = vector.shape_cast %64 : vector<128xf32> to vector<1x128xf32>
    %cst_36 = arith.constant 5.000000e-03 : f32
    %66 = vector.broadcast %cst_36 : f32 to vector<1x128xf32>
    %67 = arith.mulf %65, %66 : vector<1x128xf32>
    %c0_37 = arith.constant 0 : index
    %c0_38 = arith.constant 0 : index
    %68 = vector.load %arg13[%c0_37, %c0_38] : memref<1x128xf32, #tpu.memory_space<vmem>>, vector<1x128xf32>
    %69 = arith.mulf %68, %67 : vector<1x128xf32>
    %70 = vector.broadcast %69 : vector<1x128xf32> to vector<256x128xf32>
    %71 = arith.subf %63, %70 : vector<256x128xf32>
    %cst_39 = arith.constant 0.000000e+00 : f32
    %72 = vector.shape_cast %2 : vector<256x1xi1> to vector<256x1xi1>
    %73 = vector.broadcast %72 : vector<256x1xi1> to vector<256x128xi1>
    %74 = vector.broadcast %cst_39 : f32 to vector<256x128xf32>
    %75 = arith.select %73, %71, %74 : vector<256x128xi1>, vector<256x128xf32>
    %76 = arith.mulf %75, %75 : vector<256x128xf32>
    %cst_40 = arith.constant dense<0.000000e+00> : vector<128xf32>
    %77 = vector.multi_reduction <add>, %76, %cst_40 [0] : vector<256x128xf32> to vector<128xf32>
    %78 = vector.shape_cast %77 : vector<128xf32> to vector<1x128xf32>
    %cst_41 = arith.constant 5.000000e-03 : f32
    %79 = vector.broadcast %cst_41 : f32 to vector<1x128xf32>
    %80 = arith.mulf %78, %79 : vector<1x128xf32>
    %cst_42 = arith.constant 9.99999974E-6 : f32
    %81 = vector.broadcast %cst_42 : f32 to vector<1x128xf32>
    %82 = arith.addf %80, %81 : vector<1x128xf32>
    %83 = math.rsqrt %82 : vector<1x128xf32>
    %84 = vector.broadcast %83 : vector<1x128xf32> to vector<256x128xf32>
    %85 = arith.mulf %75, %84 : vector<256x128xf32>
    %c0_43 = arith.constant 0 : index
    %c0_44 = arith.constant 0 : index
    %86 = vector.load %arg11[%c0_43, %c0_44] : memref<1x128xf32, #tpu.memory_space<vmem>>, vector<1x128xf32>
    %87 = vector.broadcast %86 : vector<1x128xf32> to vector<256x128xf32>
    %88 = arith.mulf %85, %87 : vector<256x128xf32>
    %c0_45 = arith.constant 0 : index
    %c0_46 = arith.constant 0 : index
    %89 = vector.load %arg12[%c0_45, %c0_46] : memref<1x128xf32, #tpu.memory_space<vmem>>, vector<1x128xf32>
    %90 = vector.broadcast %89 : vector<1x128xf32> to vector<256x128xf32>
    %91 = arith.addf %88, %90 : vector<256x128xf32>
    %92 = arith.negf %91 : vector<256x128xf32>
    %93 = math.exp %92 : vector<256x128xf32>
    %cst_47 = arith.constant 1.000000e+00 : f32
    %94 = vector.broadcast %cst_47 : f32 to vector<256x128xf32>
    %95 = arith.addf %94, %93 : vector<256x128xf32>
    %96 = arith.divf %94, %95 : vector<256x128xf32>
    %c0_48 = arith.constant 0 : index
    %c0_49 = arith.constant 0 : index
    %97 = vector.load %arg14[%c0_48, %c0_49] : memref<256x128xf32, #tpu.memory_space<vmem>>, vector<256x128xf32>
    tpu.vector_store %arg14[%c0_48, %c0_49], %96 {strides = array<i32>} : memref<256x128xf32, #tpu.memory_space<vmem>>, vector<256x128xf32>,
    return
  }
}

</mosaic_0001>

<bundles_post_ra>
// kernel: gcn_dev_forward.1
= control target key start
LH: loop header
LB: loop body
LE: loop exit
PB: predicated region body
PF: predicated region fallthrough
CT: control target
= control target key end

     0   :  { %s5059_s1 = inlined_call_operand.vmem [shape: bf16[256,128], index: 1, kind: input, shape index: {}]   ;;  %s5060_s0 = inlined_call_operand.vmem [shape: bf16[256,256], index: 0, kind: input, shape index: {}]   ;;  %s5061_s3 = inlined_call_operand.vmem [shape: bf16[128,128], index: 3, kind: input, shape index: {}]   ;;  %s5062_s2 = inlined_call_operand.vmem [shape: bf16[128,128], index: 2, kind: input, shape index: {}]   ;;  %s5063_s4 = inlined_call_operand.vmem [shape: f32[1,128], index: 4, kind: input, shape index: {}]   ;;  %s5064_s9 = inlined_call_operand.vmem [shape: bf16[128,128], index: 9, kind: input, shape index: {}]   ;;  %s5065_s7 = inlined_call_operand.vmem [shape: f32[1,128], index: 7, kind: input, shape index: {}]   ;;  %s5066_s5 = inlined_call_operand.vmem [shape: f32[1,128], index: 5, kind: input, shape index: {}]   ;;  %s5067_s6 = inlined_call_operand.vmem [shape: f32[1,128], index: 6, kind: input, shape index: {}]   ;;  %s5068_s8 = inlined_call_operand.vmem [shape: bf16[128,128], index: 8, kind: input, shape index: {}]   ;;  %s5069_s10 = inlined_call_operand.vmem [shape: f32[1,128], index: 10, kind: input, shape index: {}]   ;;  %s5070_s13 = inlined_call_operand.vmem [shape: f32[1,128], index: 13, kind: input, shape index: {}]   ;;  %s5071_s11 = inlined_call_operand.vmem [shape: f32[1,128], index: 11, kind: input, shape index: {}]   ;;  %s5072_s12 = inlined_call_operand.vmem [shape: f32[1,128], index: 12, kind: input, shape index: {}]   ;;  %s5073_s14 = inlined_call_operand.vmem [shape: f32[256,128], index: 14, kind: output, shape index: {}]  }
   0x1   :  { %v3696_v0 = vld [vmem:[%s5059_s1 + $0x78] sm:$0xff]   ;;  %v3707_v2 = vld [vmem:[%s5059_s1 + $0x70] sm:$0xff]   ;;  %v3719_v4 = vld [vmem:[%s5059_s1 + $0x68] sm:$0xff]  }
   0x2   :  { %v3701_v1 = vld [vmem:[%s5059_s1 + $0x38] sm:$0xff]   ;;  %2871 = vmatprep.subr.bf16.mxu0 %v3696_v0  ;;  %v3713_v3 = vld [vmem:[%s5059_s1 + $0x30] sm:$0xff]   ;;  %v3725_v5 = vld [vmem:[%s5059_s1 + $0x28] sm:$0xff]  }
   0x3   :  { %2872 = vmatpush3.bf16.msra.mxu0 %v3701_v1  ;;  %v3731_v6 = vld [vmem:[%s5059_s1 + $0x60] sm:$0xff]   ;;  %v3743_v8 = vld [vmem:[%s5059_s1 + $0x58] sm:$0xff]   ;;  %v3758_v11 = vld [vmem:[%s5059_s1 + $0x50] sm:$0xff]  }
   0x4   :  { %2873 = vmatprep.subr.bf16.mxu0 %v3707_v2  ;;  %v3737_v7 = vld [vmem:[%s5059_s1 + $0x20] sm:$0xff]   ;;  %v3748_v9 = vld [vmem:[%s5059_s1 + $0x18] sm:$0xff]   ;;  %v3394_v13 = vld [vmem:[%s5059_s1 + $0x10] sm:$0xff]  }
   0x5   :  { %v3398_v10 = vld [vmem:[%s5059_s1] sm:$0xff]   ;;  %v3774_v14 = vld [vmem:[%s5059_s1 + $0x48] sm:$0xff]   ;;  %v3402_v18 = vld [vmem:[%s5060_s0 + $0x14] ss:$8 sps:$4 sm:$0xff]  }
   0x6   :  { %v3763_v12 = vld [vmem:[%s5060_s0 + $0x4] ss:$8 sps:$4 sm:$0xff]   ;;  %3207 = vmatprep.mubr.bf16.mxu1 %v3398_v10  ;;  %v3399_v17 = vld [vmem:[%s5060_s0] ss:$8 sps:$4 sm:$0xff]   ;;  %v3441_v19 = vld [vmem:[%s5061_s3 + $0x38] sm:$0xff]  }
   0x7   :  { %2874 = vmatpush3.bf16.msra.mxu0 %v3713_v3  ;;  %465 = vmatprep.mubr.bf16.mxu0 %v3763_v12  ;;  %v3396_v15 = vld [vmem:[%s5059_s1 + $0x8] sm:$0xff]   ;;  %v3783_v16 = vld [vmem:[%s5059_s1 + $0x40] sm:$0xff]   ;;  %v3442_v20 = vld [vmem:[%s5061_s3 + $0x30] sm:$0xff]  }
   0x8   :  { %2875 = vmatprep.subr.bf16.mxu0 %v3719_v4  ;;  %v3404_v21 = vld [vmem:[%s5060_s0 + $0x10] ss:$8 sps:$4 sm:$0xff]   ;;  %3191 = vmatprep.subr.bf16.mxu1 %v3441_v19  ;;  %v3405_v22 = vld [vmem:[%s5060_s0 + $0x24] ss:$8 sps:$4 sm:$0xff]   ;;  %v3407_v25 = vld [vmem:[%s5060_s0 + $0x20] ss:$8 sps:$4 sm:$0xff]  }
   0x9   :  { %3192 = vmatpush3.bf16.msra.mxu1 %v3441_v19  ;;  %v3443_v23 = vld [vmem:[%s5061_s3 + $0x28] sm:$0xff]   ;;  %v3444_v24 = vld [vmem:[%s5061_s3 + $0x20] sm:$0xff]   ;;  %v3408_v26 = vld [vmem:[%s5060_s0 + $0x34] ss:$8 sps:$4 sm:$0xff]  }
   0xa   :  { %3193 = vmatprep.subr.bf16.mxu1 %v3442_v20  ;;  %v3445_v27 = vld [vmem:[%s5061_s3 + $0x18] sm:$0xff]   ;;  %v3446_v28 = vld [vmem:[%s5061_s3 + $0x10] sm:$0xff]   ;;  %v3411_v30 = vld [vmem:[%s5060_s0 + $0x44] ss:$8 sps:$4 sm:$0xff]  }
   0xb   :  { %2876 = vmatpush3.bf16.msra.mxu0 %v3725_v5  ;;  %v3410_v29 = vld [vmem:[%s5060_s0 + $0x30] ss:$8 sps:$4 sm:$0xff]   ;;  %v3447_v31 = vld [vmem:[%s5061_s3 + $0x8] sm:$0xff]   ;;  %v3448_v32 = vld [vmem:[%s5061_s3] sm:$0xff]  }
   0xc   :  { %2877 = vmatprep.subr.bf16.mxu0 %v3731_v6  ;;  %v3413_v33 = vld [vmem:[%s5060_s0 + $0x40] ss:$8 sps:$4 sm:$0xff]   ;;  %v3414_v34 = vld [vmem:[%s5060_s0 + $0x54] ss:$8 sps:$4 sm:$0xff]   ;;  %v3416_v37 = vld [vmem:[%s5060_s0 + $0x50] ss:$8 sps:$4 sm:$0xff]  }
   0xd   :  { %3194 = vmatpush3.bf16.msra.mxu1 %v3442_v20  ;;  %v3449_v35 = vld [vmem:[%s5062_s2 + $0x38] sm:$0xff]   ;;  %v3450_v36 = vld [vmem:[%s5062_s2 + $0x30] sm:$0xff]   ;;  %v3417_v38 = vld [vmem:[%s5060_s0 + $0x64] ss:$8 sps:$4 sm:$0xff]  }
   0xe   :  { %3195 = vmatprep.subr.bf16.mxu1 %v3443_v23  ;;  %v3451_v39 = vld [vmem:[%s5062_s2 + $0x28] sm:$0xff]   ;;  %v3452_v40 = vld [vmem:[%s5062_s2 + $0x20] sm:$0xff]   ;;  %v3420_v42 = vld [vmem:[%s5060_s0 + $0x74] ss:$8 sps:$4 sm:$0xff]  }
   0xf   :  { %2878 = vmatpush3.bf16.msra.mxu0 %v3737_v7  ;;  %v3419_v41 = vld [vmem:[%s5060_s0 + $0x60] ss:$8 sps:$4 sm:$0xff]   ;;  %v3422_v43 = vld [vmem:[%s5060_s0 + $0x70] ss:$8 sps:$4 sm:$0xff]   ;;  %v3423_v44 = vld [vmem:[%s5060_s0 + $0x84] ss:$8 sps:$4 sm:$0xff]  }
  0x10   :  { %2879 = vmatprep.subr.bf16.mxu0 %v3743_v8  ;;  %v3425_v45 = vld [vmem:[%s5060_s0 + $0x80] ss:$8 sps:$4 sm:$0xff]   ;;  %v3426_v46 = vld [vmem:[%s5060_s0 + $0x94] ss:$8 sps:$4 sm:$0xff]   ;;  %v3428_v48 = vld [vmem:[%s5060_s0 + $0x90] ss:$8 sps:$4 sm:$0xff]  }
  0x11   :  { %3196 = vmatpush3.bf16.msra.mxu1 %v3443_v23  ;;  %v3453_v47 = vld [vmem:[%s5062_s2 + $0x18] sm:$0xff]   ;;  %v3429_v49 = vld [vmem:[%s5060_s0 + $0xa4] ss:$8 sps:$4 sm:$0xff]   ;;  %v3454_v50 = vld [vmem:[%s5062_s2 + $0x10] sm:$0xff]  }
  0x12   :  { %3197 = vmatprep.subr.bf16.mxu1 %v3444_v24  ;;  %v3455_v51 = vld [vmem:[%s5062_s2 + $0x8] sm:$0xff]   ;;  %v3432_v53 = vld [vmem:[%s5060_s0 + $0xb4] ss:$8 sps:$4 sm:$0xff]   ;;  %v3456_v54 = vld [vmem:[%s5062_s2] sm:$0xff]  }
  0x13   :  { %2880 = vmatpush3.bf16.msra.mxu0 %v3748_v9  ;;  %v3431_v52 = vld [vmem:[%s5060_s0 + $0xa0] ss:$8 sps:$4 sm:$0xff]   ;;  %v3434_v55 = vld [vmem:[%s5060_s0 + $0xb0] ss:$8 sps:$4 sm:$0xff]   ;;  %v3435_v56 = vld [vmem:[%s5060_s0 + $0xc4] ss:$8 sps:$4 sm:$0xff]  }
  0x14   :  { %2881 = vmatprep.subr.bf16.mxu0 %v3758_v11  ;;  %v3437_v57 = vld [vmem:[%s5060_s0 + $0xc0] ss:$8 sps:$4 sm:$0xff]   ;;  %v3438_v58 = vld [vmem:[%s5060_s0 + $0xd4] ss:$8 sps:$4 sm:$0xff]   ;;  %v3440_v59 = vld [vmem:[%s5060_s0 + $0xd0] ss:$8 sps:$4 sm:$0xff]  }
  0x15   :  { %3198 = vmatpush3.bf16.msra.mxu1 %v3444_v24  ;;  %v3457_v60 = vld [vmem:[%s5060_s0 + $0xe4] ss:$8 sps:$4 sm:$0xff]   ;;  %v3459_v61 = vld [vmem:[%s5060_s0 + $0xe0] ss:$8 sps:$4 sm:$0xff]  }
  0x16   :  { %3199 = vmatprep.subr.bf16.mxu1 %v3445_v27 }
  0x17   :  { %2882 = vmatpush3.bf16.msra.mxu0 %v3394_v13 }
  0x18   :  { %2883 = vmatprep.subr.bf16.mxu0 %v3774_v14 }
  0x19   :  { %3200 = vmatpush3.bf16.msra.mxu1 %v3445_v27 }
  0x1a   :  { %3201 = vmatprep.subr.bf16.mxu1 %v3446_v28 }
  0x1b   :  { %2884 = vmatpush3.bf16.msra.mxu0 %v3396_v15 }
  0x1c   :  { %2885 = vmatprep.subr.bf16.mxu0 %v3783_v16 }
  0x1d   :  { %3202 = vmatpush3.bf16.msra.mxu1 %v3446_v28 }
  0x1e   :  { %3203 = vmatprep.subr.bf16.mxu1 %v3447_v31 }
  0x1f   :  { %2886 = vmatpush3.bf16.msra.mxu0 %v3398_v10 }
  0x21   :  { %3204 = vmatpush3.bf16.msra.mxu1 %v3447_v31 }
  0x22   :  { %466 = vmatmul.mubr.bf16.vlgmr.msra.gmra.mxu0 %v3399_v17  ;;  %3205 = vmatprep.subr.bf16.mxu1 %v3448_v32 }
  0x23   :  { %473 = vmatprep.mubr.bf16.mxu0 %v3402_v18 }
  0x25   :  { %3206 = vmatpush3.bf16.msra.mxu1 %v3448_v32 }
  0x26   :  { %3239 = vmatprep.subr.bf16.mxu1 %v3449_v35 }
  0x28   :  { %3208 = vmatmul.mubr.bf16.vlgmr.msra.gmra.mxu1 %v3396_v15 }
  0x29   :  { %3211 = vmatprep.mubr.bf16.mxu1 %v3394_v13  ;;  %3240 = vmatpush3.bf16.msra.mxu1 %v3449_v35 }
  0x2a   :  { %474 = vmatmul.mubr.bf16.gmra.mxu0 %v3404_v21  ;;  %3241 = vmatprep.subr.bf16.mxu1 %v3450_v36 }
  0x2b   :  { %481 = vmatprep.mubr.bf16.mxu0 %v3405_v22 }
  0x2d   :  { %3242 = vmatpush3.bf16.msra.mxu1 %v3450_v36 }
  0x2e   :  { %3243 = vmatprep.subr.bf16.mxu1 %v3451_v39 }
  0x30   :  { %3212 = vmatmul.mubr.bf16.gmra.mxu1 %v3748_v9 }
  0x31   :  { %3215 = vmatprep.mubr.bf16.mxu1 %v3737_v7  ;;  %3244 = vmatpush3.bf16.msra.mxu1 %v3451_v39 }
  0x32   :  { %482 = vmatmul.mubr.bf16.gmra.mxu0 %v3407_v25  ;;  %3245 = vmatprep.subr.bf16.mxu1 %v3452_v40 }
  0x33   :  { %489 = vmatprep.mubr.bf16.mxu0 %v3408_v26 }
  0x35   :  { %3246 = vmatpush3.bf16.msra.mxu1 %v3452_v40 }
  0x36   :  { %3247 = vmatprep.subr.bf16.mxu1 %v3453_v47 }
  0x38   :  { %3216 = vmatmul.mubr.bf16.gmra.mxu1 %v3725_v5 }
  0x39   :  { %3219 = vmatprep.mubr.bf16.mxu1 %v3713_v3  ;;  %3248 = vmatpush3.bf16.msra.mxu1 %v3453_v47 }
  0x3a   :  { %490 = vmatmul.mubr.bf16.gmra.mxu0 %v3410_v29  ;;  %3249 = vmatprep.subr.bf16.mxu1 %v3454_v50 }
  0x3b   :  { %497 = vmatprep.mubr.bf16.mxu0 %v3411_v30 }
  0x3d   :  { %3250 = vmatpush3.bf16.msra.mxu1 %v3454_v50 }
  0x3e   :  { %3251 = vmatprep.subr.bf16.mxu1 %v3455_v51 }
  0x40   :  { %3220 = vmatmul.mubr.bf16.gmra.mxu1 %v3701_v1 }
  0x41   :  { %3223 = vmatprep.mubr.bf16.mxu1 %v3783_v16  ;;  %3252 = vmatpush3.bf16.msra.mxu1 %v3455_v51 }
  0x42   :  { %498 = vmatmul.mubr.bf16.gmra.mxu0 %v3413_v33  ;;  %3253 = vmatprep.subr.bf16.mxu1 %v3456_v54 }
  0x43   :  { %505 = vmatprep.mubr.bf16.mxu0 %v3414_v34 }
  0x45   :  { %3254 = vmatpush3.bf16.msra.mxu1 %v3456_v54 }
  0x48   :  { %3224 = vmatmul.mubr.bf16.gmra.mxu1 %v3774_v14 }
  0x49   :  { %3227 = vmatprep.mubr.bf16.mxu1 %v3758_v11 }
  0x4a   :  { %506 = vmatmul.mubr.bf16.gmra.mxu0 %v3416_v37 }
  0x4b   :  { %513 = vmatprep.mubr.bf16.mxu0 %v3417_v38 }
  0x50   :  { %3228 = vmatmul.mubr.bf16.gmra.mxu1 %v3743_v8 }
  0x51   :  { %3231 = vmatprep.mubr.bf16.mxu1 %v3731_v6 }
  0x52   :  { %514 = vmatmul.mubr.bf16.gmra.mxu0 %v3419_v41 }
  0x53   :  { %521 = vmatprep.mubr.bf16.mxu0 %v3420_v42 }
  0x58   :  { %3232 = vmatmul.mubr.bf16.gmra.mxu1 %v3719_v4 }
  0x59   :  { %3235 = vmatprep.mubr.bf16.mxu1 %v3707_v2 }
  0x5a   :  { %522 = vmatmul.mubr.bf16.gmra.mxu0 %v3422_v43 }
  0x5b   :  { %529 = vmatprep.mubr.bf16.mxu0 %v3423_v44 }
  0x60   :  { %3236 = vmatmul.mubr.bf16.gmra.mxu1 %v3696_v0 }
  0x62   :  { %530 = vmatmul.mubr.bf16.gmra.mxu0 %v3425_v45 }
  0x63   :  { %537 = vmatprep.mubr.bf16.mxu0 %v3426_v46 }
  0x6a   :  { %538 = vmatmul.mubr.bf16.gmra.mxu0 %v3428_v48 }
  0x6b   :  { %545 = vmatprep.mubr.bf16.mxu0 %v3429_v49 }
  0x72   :  { %546 = vmatmul.mubr.bf16.gmra.mxu0 %v3431_v52 }
  0x73   :  { %553 = vmatprep.mubr.bf16.mxu0 %v3432_v53 }
  0x7a   :  { %554 = vmatmul.mubr.bf16.gmra.mxu0 %v3434_v55 }
  0x7b   :  { %561 = vmatprep.mubr.bf16.mxu0 %v3435_v56 }
  0x82   :  { %562 = vmatmul.mubr.bf16.gmra.mxu0 %v3437_v57 }
  0x83   :  { %569 = vmatprep.mubr.bf16.mxu0 %v3438_v58 }
  0x8a   :  { %570 = vmatmul.mubr.bf16.gmra.mxu0 %v3440_v59 }
  0x8b   :  { %577 = vmatprep.mubr.bf16.mxu0 %v3457_v60 }
  0x92   :  { %578 = vmatmul.mubr.bf16.gmra.mxu0 %v3459_v61 }
  0xe2   :  { %v2887_v62 = vpop.f32.mrf.mxu0 }
  0xe4   :  { %v2888_v63 = vpop.f32.mrf.mxu0 }
  0xe5   :  { %v2889_v2 = vadd.f32 %v2888_v63, %v2887_v62 }
  0xe6   :  { %v2890_v0 = vpop.f32.mrf.mxu0 }
  0xe8   :  { %v2891_v1 = vpop.f32.mrf.mxu0  ;;  %v3934_v29 = vpop.f32.mrf.mxu1 }
  0xe9   :  { %v2892_v3 = vadd.f32 %v2891_v1, %v2890_v0 }
  0xea   :  { %v2893_v4 = vpop.f32.mrf.mxu0  ;;  %v3936_v31 = vpop.f32.mrf.mxu1 }
  0xeb   :  { %v594_v5 = vpack.c.bf16 %v2892_v3, %v2889_v2 }
  0xec   :  { %v2894_v6 = vpop.f32.mrf.mxu0  ;;  %v3938_v35 = vpop.f32.mrf.mxu1 }
  0xed   :  { %3255 = vmatprep.mubr.bf16.mxu1 %v594_v5  ;;  %v2895_v9 = vadd.f32 %v2894_v6, %v2893_v4 }
  0xee   :  { %v2896_v7 = vpop.f32.mrf.mxu0  ;;  %v3940_v38 = vpop.f32.mrf.mxu1 }
  0xf0   :  { %v2897_v8 = vpop.f32.mrf.mxu0  ;;  %v3942_v40 = vpop.f32.mrf.mxu1 }
  0xf1   :  { %v2898_v10 = vadd.f32 %v2897_v8, %v2896_v7 }
  0xf2   :  { %v2899_v11 = vpop.f32.mrf.mxu0  ;;  %v3944_v42 = vpop.f32.mrf.mxu1 }
  0xf3   :  { %v595_v13 = vpack.c.bf16 %v2898_v10, %v2895_v9 }
  0xf4   :  { %v2900_v14 = vpop.f32.mrf.mxu0  ;;  %v3946_v46 = vpop.f32.mrf.mxu1 }
  0xf5   :  { %3256 = vmatmul.mubr.bf16.vlgmr.msra.gmra.mxu1 %v595_v13  ;;  %v2901_v17 = vadd.f32 %v2900_v14, %v2899_v11 }
  0xf6   :  { %v2902_v15 = vpop.f32.mrf.mxu0  ;;  %v3948_v49 = vpop.f32.mrf.mxu1 }
  0xf8   :  { %v2903_v16 = vpop.f32.mrf.mxu0  ;;  %v3950_v51 = vpop.f32.mrf.mxu1 }
  0xf9   :  { %v2904_v18 = vadd.f32 %v2903_v16, %v2902_v15 }
  0xfa   :  { %v2905_v19 = vpop.f32.mrf.mxu0  ;;  %v3952_v53 = vpop.f32.mrf.mxu1 }
  0xfb   :  { %v596_v20 = vpack.c.bf16 %v2904_v18, %v2901_v17 }
  0xfc   :  { %v2906_v21 = vpop.f32.mrf.mxu0  ;;  %v3954_v57 = vpop.f32.mrf.mxu1 }
  0xfd   :  { %3259 = vmatprep.mubr.bf16.mxu1 %v596_v20  ;;  %v2907_v24 = vadd.f32 %v2906_v21, %v2905_v19 }
  0xfe   :  { %v2908_v22 = vpop.f32.mrf.mxu0  ;;  %v3956_v60 = vpop.f32.mrf.mxu1 }
 0x100   :  { %v2909_v23 = vpop.f32.mrf.mxu0  ;;  %v3958_v62 = vpop.f32.mrf.mxu1 }
 0x101   :  { %v2910_v25 = vadd.f32 %v2909_v23, %v2908_v22 }
 0x102   :  { %v2911_v26 = vpop.f32.mrf.mxu0  ;;  %v3960_v0 = vpop.f32.mrf.mxu1 }
 0x103   :  { %v597_v27 = vpack.c.bf16 %v2910_v25, %v2907_v24 }
 0x104   :  { %v2912_v28 = vpop.f32.mrf.mxu0  ;;  %v3962_v4 = vpop.f32.mrf.mxu1 }
 0x105   :  { %3260 = vmatmul.mubr.bf16.gmra.mxu1 %v597_v27  ;;  %v2913_v33 = vadd.f32 %v2912_v28, %v2911_v26 }
 0x106   :  { %v2914_v30 = vpop.f32.mrf.mxu0  ;;  %v3964_v7 = vpop.f32.mrf.mxu1 }
 0x108   :  { %v2915_v32 = vpop.f32.mrf.mxu0  ;;  %v3966_v9 = vpop.f32.mrf.mxu1 }
 0x109   :  { %v2916_v34 = vadd.f32 %v2915_v32, %v2914_v30 }
 0x10a   :  { %v2917_v36 = vpop.f32.mrf.mxu0  ;;  %v3968_v11 = vpop.f32.mrf.mxu1 }
 0x10b   :  { %v598_v37 = vpack.c.bf16 %v2916_v34, %v2913_v33 }
 0x10c   :  { %v2918_v39 = vpop.f32.mrf.mxu0  ;;  %v3970_v16 = vpop.f32.mrf.mxu1 }
 0x10d   :  { %3263 = vmatprep.mubr.bf16.mxu1 %v598_v37  ;;  %v2919_v44 = vadd.f32 %v2918_v39, %v2917_v36  ;;  %v3460_v39 = vld [vmem:[%s5060_s0 + $0xf4] ss:$8 sps:$4 sm:$0xff]  }
 0x10e   :  { %v2920_v41 = vpop.f32.mrf.mxu0  ;;  %v3972_v19 = vpop.f32.mrf.mxu1  ;;  %585 = vmatprep.mubr.bf16.mxu0 %v3460_v39 }
 0x110   :  { %v2921_v43 = vpop.f32.mrf.mxu0  ;;  %v3974_v21 = vpop.f32.mrf.mxu1 }
 0x111   :  { %v2922_v45 = vadd.f32 %v2921_v43, %v2920_v41  ;;  %v3462_v43 = vld [vmem:[%s5060_s0 + $0xf0] ss:$8 sps:$4 sm:$0xff]  }
 0x112   :  { %v2923_v47 = vpop.f32.mrf.mxu0  ;;  %v3976_v23 = vpop.f32.mrf.mxu1  ;;  %586 = vmatmul.mubr.bf16.gmra.mxu0 %v3462_v43  ;;  %v3996_v43 = vld [vmem:[%s5063_s4] ss:$0 sm:$0xff] }
 0x113   :  { %v599_v48 = vpack.c.bf16 %v2922_v45, %v2919_v44  ;;  %1567 = vmatprep.mubr.bf16.mxu0 %v3763_v12 }
 0x114   :  { %v2924_v50 = vpop.f32.mrf.mxu0  ;;  %v3978_v27 = vpop.f32.mrf.mxu1 }
 0x115   :  { %3264 = vmatmul.mubr.bf16.gmra.mxu1 %v599_v48  ;;  %v2925_v55 = vadd.f32 %v2924_v50, %v2923_v47 }
 0x116   :  { %v2926_v52 = vpop.f32.mrf.mxu0  ;;  %v3980_v32 = vpop.f32.mrf.mxu1 }
 0x118   :  { %v2927_v54 = vpop.f32.mrf.mxu0  ;;  %v3233_v34 = vpop.f32.mrf.mxu1 }
 0x119   :  { %v2928_v56 = vadd.f32 %v2927_v54, %v2926_v52 }
 0x11a   :  { %v2929_v58 = vpop.f32.mrf.mxu0  ;;  %v3982_v37 = vpop.f32.mrf.mxu1 }
 0x11b   :  { %v600_v59 = vpack.c.bf16 %v2928_v56, %v2925_v55 }
 0x11c   :  { %v2930_v61 = vpop.f32.mrf.mxu0  ;;  %v3234_v47 = vpop.f32.mrf.mxu1 }
 0x11d   :  { %3267 = vmatprep.mubr.bf16.mxu1 %v600_v59  ;;  %v2931_v2 = vadd.f32 %v2930_v61, %v2929_v58 }
 0x11e   :  { %v2932_v63 = vpop.f32.mrf.mxu0  ;;  %v823_v52 = vpop.f32.mrf.mxu1 }
 0x120   :  { %v2933_v1 = vpop.f32.mrf.mxu0  ;;  %v3237_v55 = vpop.f32.mrf.mxu1 }
 0x121   :  { %v2934_v3 = vadd.f32 %v2933_v1, %v2932_v63 }
 0x122   :  { %v2935_v5 = vpop.f32.mrf.mxu0  ;;  %v836_v58 = vpop.f32.mrf.mxu1 }
 0x123   :  { %v601_v6 = vpack.c.bf16 %v2934_v3, %v2931_v2 }
 0x124   :  { %v2936_v8 = vpop.f32.mrf.mxu0  ;;  %v3238_v1 = vpop.f32.mrf.mxu1 }
 0x125   :  { %3268 = vmatmul.mubr.bf16.gmra.mxu1 %v601_v6  ;;  %v2937_v14 = vadd.f32 %v2936_v8, %v2935_v5 }
 0x126   :  { %v2938_v10 = vpop.f32.mrf.mxu0  ;;  %v839_v5 = vpop.f32.mrf.mxu1 }
 0x128   :  { %v2939_v13 = vpop.f32.mrf.mxu0 }
 0x129   :  { %v2940_v15 = vadd.f32 %v2939_v13, %v2938_v10 }
 0x12a   :  { %v2941_v17 = vpop.f32.mrf.mxu0 }
 0x12b   :  { %v602_v18 = vpack.c.bf16 %v2940_v15, %v2937_v14 }
 0x12c   :  { %v2942_v20 = vpop.f32.mrf.mxu0 }
 0x12d   :  { %3271 = vmatprep.mubr.bf16.mxu1 %v602_v18  ;;  %v2943_v25 = vadd.f32 %v2942_v20, %v2941_v17 }
 0x12e   :  { %v2944_v22 = vpop.f32.mrf.mxu0 }
 0x130   :  { %v2945_v24 = vpop.f32.mrf.mxu0 }
 0x131   :  { %v2946_v26 = vadd.f32 %v2945_v24, %v2944_v22 }
 0x132   :  { %v2947_v28 = vpop.f32.mrf.mxu0 }
 0x133   :  { %v603_v30 = vpack.c.bf16 %v2946_v26, %v2943_v25 }
 0x134   :  { %v2948_v33 = vpop.f32.mrf.mxu0 }
 0x135   :  { %3272 = vmatmul.mubr.bf16.gmra.mxu1 %v603_v30  ;;  %v2949_v44 = vadd.f32 %v2948_v33, %v2947_v28 }
 0x136   :  { %v2950_v36 = vpop.f32.mrf.mxu0 }
 0x138   :  { %v2951_v41 = vpop.f32.mrf.mxu0 }
 0x139   :  { %v2952_v45 = vadd.f32 %v2951_v41, %v2950_v36 }
 0x13a   :  { %v2953_v48 = vpop.f32.mrf.mxu0 }
 0x13b   :  { %v604_v50 = vpack.c.bf16 %v2952_v45, %v2949_v44 }
 0x13c   :  { %v2954_v54 = vpop.f32.mrf.mxu0 }
 0x13d   :  { %3275 = vmatprep.mubr.bf16.mxu1 %v604_v50  ;;  %v2955_v61 = vadd.f32 %v2954_v54, %v2953_v48 }
 0x13e   :  { %v2956_v56 = vpop.f32.mrf.mxu0 }
 0x140   :  { %v2957_v59 = vpop.f32.mrf.mxu0 }
 0x141   :  { %v2958_v63 = vadd.f32 %v2957_v59, %v2956_v56 }
 0x142   :  { %v2959_v2 = vpop.f32.mrf.mxu0 }
 0x143   :  { %v605_v3 = vpack.c.bf16 %v2958_v63, %v2955_v61 }
 0x144   :  { %v2960_v6 = vpop.f32.mrf.mxu0 }
 0x145   :  { %3276 = vmatmul.mubr.bf16.gmra.mxu1 %v605_v3  ;;  %v2961_v13 = vadd.f32 %v2960_v6, %v2959_v2 }
 0x146   :  { %v2962_v8 = vpop.f32.mrf.mxu0 }
 0x148   :  { %v2963_v10 = vpop.f32.mrf.mxu0 }
 0x149   :  { %v2964_v14 = vadd.f32 %v2963_v10, %v2962_v8 }
 0x14a   :  { %v2965_v15 = vpop.f32.mrf.mxu0 }
 0x14b   :  { %v606_v12 = vpack.c.bf16 %v2964_v14, %v2961_v13 }
 0x14c   :  { %v2966_v17 = vpop.f32.mrf.mxu0 }
 0x14d   :  { %3279 = vmatprep.mubr.bf16.mxu1 %v606_v12  ;;  %v2967_v22 = vadd.f32 %v2966_v17, %v2965_v15 }
 0x14e   :  { %v2968_v18 = vpop.f32.mrf.mxu0 }
 0x150   :  { %v2969_v20 = vpop.f32.mrf.mxu0 }
 0x151   :  { %v2970_v24 = vadd.f32 %v2969_v20, %v2968_v18 }
 0x153   :  { %v607_v25 = vpack.c.bf16 %v2970_v24, %v2967_v22 }
 0x155   :  { %3280 = vmatmul.mubr.bf16.gmra.mxu1 %v607_v25 }
 0x1b5   :  { %v3257_v26 = vpop.f32.mrf.mxu1 }
 0x1b6   :  { %v942_v47 = vadd.f32 %v3257_v26, %v3934_v29 }
 0x1b7   :  { %v933_v28 = vpop.f32.mrf.mxu1 }
 0x1b8   :  { %v934_v41 = vadd.f32 %v933_v28, %v3936_v31  ;;  %v4008_v31 = vadd.f32 %v3996_v43, %v942_v47  ;;  %v3464_v47 = vld [vmem:[%s5064_s9 + $0x30] sm:$0xff]  }
 0x1b9   :  { %v3258_v30 = vpop.f32.mrf.mxu1 }
 0x1ba   :  { %v4003_v48 = vadd.f32 %v3996_v43, %v934_v41  ;;  %v945_v54 = vadd.f32 %v3258_v30, %v3938_v35 }
 0x1bb   :  { %v936_v33 = vpop.f32.mrf.mxu1 }
 0x1bc   :  { %v937_v39 = vadd.f32 %v936_v33, %v3940_v38  ;;  %v4015_v59 = vadd.f32 %v3996_v43, %v945_v54 }
 0x1be   :  { %v3999_v45 = vadd.f32 %v3996_v43, %v937_v39 }
 0x1c0   :  { %v1195_v38 = vadd.f32 %v3999_v45, %v4003_v48 }
 0x1c2   :  { %v1196_v56 = vadd.f32 %v1195_v38, %v4008_v31 }
 0x1c4   :  { %v1197_v63 = vadd.f32 %v1196_v56, %v4015_v59  ;;  %v3465_v56 = vld [vmem:[%s5064_s9 + $0x28] sm:$0xff]  }
 0x1c5   :  { %v3261_v34 = vpop.f32.mrf.mxu1 }
 0x1c6   :  { %v958_v35 = vadd.f32 %v3261_v34, %v3942_v40 }
 0x1c7   :  { %v949_v36 = vpop.f32.mrf.mxu1 }
 0x1c8   :  { %v950_v55 = vadd.f32 %v949_v36, %v3944_v42  ;;  %v4028_v5 = vadd.f32 %v3996_v43, %v958_v35  ;;  %v3463_v36 = vld [vmem:[%s5064_s9 + $0x38] sm:$0xff]  }
 0x1c9   :  { %v3262_v44 = vpop.f32.mrf.mxu1  ;;  %3287 = vmatprep.subr.bf16.mxu1 %v3463_v36 }
 0x1ca   :  { %v4018_v61 = vadd.f32 %v3996_v43, %v950_v55  ;;  %v961_v6 = vadd.f32 %v3262_v44, %v3946_v46  ;;  %3288 = vmatpush3.bf16.msra.mxu1 %v3463_v36 }
 0x1cb   :  { %v952_v50 = vpop.f32.mrf.mxu1  ;;  %3289 = vmatprep.subr.bf16.mxu1 %v3464_v47 }
 0x1cc   :  { %v953_v58 = vadd.f32 %v952_v50, %v3948_v49  ;;  %v1198_v42 = vadd.f32 %v1197_v63, %v4018_v61  ;;  %v4035_v40 = vadd.f32 %v3996_v43, %v961_v6 }
 0x1ce   :  { %v4022_v1 = vadd.f32 %v3996_v43, %v953_v58  ;;  %3290 = vmatpush3.bf16.msra.mxu1 %v3464_v47  ;;  %v3470_v47 = vld [vmem:[%s5064_s9] sm:$0xff]  }
 0x1cf   :  { %3291 = vmatprep.subr.bf16.mxu1 %v3465_v56 }
 0x1d0   :  { %v1199_v3 = vadd.f32 %v1198_v42, %v4022_v1 }
 0x1d2   :  { %v1200_v13 = vadd.f32 %v1199_v3, %v4028_v5  ;;  %3292 = vmatpush3.bf16.msra.mxu1 %v3465_v56 }
 0x1d4   :  { %v1201_v17 = vadd.f32 %v1200_v13, %v4035_v40  ;;  %v3467_v13 = vld [vmem:[%s5064_s9 + $0x18] sm:$0xff]  }
 0x1d5   :  { %v3265_v52 = vpop.f32.mrf.mxu1 }
 0x1d7   :  { %v965_v29 = vpop.f32.mrf.mxu1 }
 0x1d8   :  { %v966_v8 = vadd.f32 %v965_v29, %v3952_v53  ;;  %v974_v53 = vadd.f32 %v3265_v52, %v3950_v51 }
 0x1d9   :  { %v3266_v2 = vpop.f32.mrf.mxu1 }
 0x1da   :  { %v4038_v12 = vadd.f32 %v3996_v43, %v966_v8  ;;  %v4048_v24 = vadd.f32 %v3996_v43, %v974_v53  ;;  %v977_v25 = vadd.f32 %v3266_v2, %v3954_v57 }
 0x1db   :  { %v968_v49 = vpop.f32.mrf.mxu1 }
 0x1dc   :  { %v969_v14 = vadd.f32 %v968_v49, %v3956_v60  ;;  %v1202_v20 = vadd.f32 %v1201_v17, %v4038_v12  ;;  %v4055_v33 = vadd.f32 %v3996_v43, %v977_v25 }
 0x1de   :  { %v4042_v18 = vadd.f32 %v3996_v43, %v969_v14 }
 0x1e0   :  { %v1203_v22 = vadd.f32 %v1202_v20, %v4042_v18 }
 0x1e2   :  { %v1204_v28 = vadd.f32 %v1203_v22, %v4048_v24 }
 0x1e4   :  { %v1205_v39 = vadd.f32 %v1204_v28, %v4055_v33 }
 0x1e5   :  { %v3269_v10 = vpop.f32.mrf.mxu1 }
 0x1e7   :  { %v981_v15 = vpop.f32.mrf.mxu1 }
 0x1e8   :  { %v982_v26 = vadd.f32 %v981_v15, %v3960_v0 }
 0x1e9   :  { %v3270_v46 = vpop.f32.mrf.mxu1 }
 0x1ea   :  { %v4058_v51 = vadd.f32 %v3996_v43, %v982_v26  ;;  %v993_v54 = vadd.f32 %v3270_v46, %v3962_v4 }
 0x1eb   :  { %v984_v60 = vpop.f32.mrf.mxu1 }
 0x1ec   :  { %v985_v30 = vadd.f32 %v984_v60, %v3964_v7  ;;  %v990_v7 = vadd.f32 %v3269_v10, %v3958_v62  ;;  %v1206_v41 = vadd.f32 %v1205_v39, %v4058_v51  ;;  %v2971_v62 = vpop.f32.mrf.mxu0  ;;  %v4084_v2 = vadd.f32 %v3996_v43, %v993_v54  ;;  %v3468_v60 = vld [vmem:[%s5064_s9 + $0x10] sm:$0xff]  }
 0x1ee   :  { %v4065_v57 = vadd.f32 %v3996_v43, %v985_v30  ;;  %v4074_v52 = vadd.f32 %v3996_v43, %v990_v7  ;;  %v2972_v63 = vpop.f32.mrf.mxu0 }
 0x1ef   :  { %v2973_v26 = vadd.f32 %v2972_v63, %v2971_v62 }
 0x1f0   :  { %v1207_v50 = vadd.f32 %v1206_v41, %v4065_v57  ;;  %v2974_v4 = vpop.f32.mrf.mxu0 }
 0x1f2   :  { %v1208_v58 = vadd.f32 %v1207_v50, %v4074_v52 }
 0x1f4   :  { %v1209_v42 = vadd.f32 %v1208_v58, %v4084_v2 }
 0x1f5   :  { %v3273_v34 = vpop.f32.mrf.mxu1 }
 0x1f6   :  { %v1006_v49 = vadd.f32 %v3273_v34, %v3966_v9  ;;  %v3469_v34 = vld [vmem:[%s5064_s9 + $0x8] sm:$0xff]  }
 0x1f7   :  { %v997_v0 = vpop.f32.mrf.mxu1 }
 0x1f8   :  { %v998_v55 = vadd.f32 %v997_v0, %v3968_v11  ;;  %v3466_v11 = vld [vmem:[%s5064_s9 + $0x20] sm:$0xff]   ;;  %v4103_v46 = vadd.f32 %v3996_v43, %v1006_v49 }
 0x1f9   :  { %v3274_v44 = vpop.f32.mrf.mxu1  ;;  %3293 = vmatprep.subr.bf16.mxu1 %v3466_v11 }
 0x1fa   :  { %v4087_v35 = vadd.f32 %v3996_v43, %v998_v55  ;;  %3294 = vmatpush3.bf16.msra.mxu1 %v3466_v11  ;;  %v1009_v53 = vadd.f32 %v3274_v44, %v3970_v16 }
 0x1fb   :  { %v1000_v38 = vpop.f32.mrf.mxu1  ;;  %3295 = vmatprep.subr.bf16.mxu1 %v3467_v13 }
 0x1fc   :  { %v1001_v29 = vadd.f32 %v1000_v38, %v3972_v19  ;;  %v2975_v19 = vpop.f32.mrf.mxu0  ;;  %v1210_v6 = vadd.f32 %v1209_v42, %v4087_v35 }
 0x1fd   :  { %v2976_v28 = vadd.f32 %v2975_v19, %v2974_v4 }
 0x1fe   :  { %v4094_v3 = vadd.f32 %v3996_v43, %v1001_v29  ;;  %v2977_v8 = vpop.f32.mrf.mxu0  ;;  %3296 = vmatpush3.bf16.msra.mxu1 %v3467_v13 }
 0x1ff   :  { %3297 = vmatprep.subr.bf16.mxu1 %v3468_v60  ;;  %v608_v41 = vpack.c.bf16 %v2976_v28, %v2973_v26 }
 0x200   :  { %v1211_v14 = vadd.f32 %v1210_v6, %v4094_v3  ;;  %v2978_v15 = vpop.f32.mrf.mxu0 }
 0x201   :  { %v2979_v16 = vadd.f32 %v2978_v15, %v2977_v8  ;;  %3283 = vmatprep.mubr.bf16.mxu1 %v608_v41 }
 0x202   :  { %v2980_v20 = vpop.f32.mrf.mxu0  ;;  %v1212_v25 = vadd.f32 %v1211_v14, %v4103_v46  ;;  %3298 = vmatpush3.bf16.msra.mxu1 %v3468_v60  ;;  %v1236_v14 = vlaneseq }
 0x203   :  { %3299 = vmatprep.subr.bf16.mxu1 %v3469_v34 }
 0x204   :  { %v2981_v30 = vpop.f32.mrf.mxu0 }
 0x205   :  { %v3277_v10 = vpop.f32.mrf.mxu1  ;;  %v2982_v39 = vadd.f32 %v2981_v30, %v2980_v20 }
 0x206   :  { %v1022_v54 = vadd.f32 %v3277_v10, %v3974_v21  ;;  %3300 = vmatpush3.bf16.msra.mxu1 %v3469_v34 }
 0x207   :  { %v1013_v17 = vpop.f32.mrf.mxu1  ;;  %v609_v44 = vpack.c.bf16 %v2982_v39, %v2979_v16  ;;  %3301 = vmatprep.subr.bf16.mxu1 %v3470_v47 }
 0x208   :  { %v1014_v9 = vadd.f32 %v1013_v17, %v3976_v23  ;;  %v4115_v23 = vadd.f32 %v3996_v43, %v1009_v53  ;;  %v4132_v62 = vadd.f32 %v3996_v43, %v1022_v54  ;;  %v4145_v53 = vshrl.u32 %v1236_v14, 7 }
 0x209   :  { %v3278_v22 = vpop.f32.mrf.mxu1  ;;  %3284 = vmatmul.mubr.bf16.gmra.mxu1 %v609_v44 }
 0x20a   :  { %v4118_v0 = vadd.f32 %v3996_v43, %v1014_v9  ;;  %v1213_v50 = vadd.f32 %v1212_v25, %v4115_v23  ;;  %v1025_v56 = vadd.f32 %v3278_v22, %v3978_v27  ;;  %3302 = vmatpush3.bf16.msra.mxu1 %v3470_v47  ;;  %v1238_v20 = vsub.s32 0, %v4145_v53 }
 0x20b   :  { %v1016_v36 = vpop.f32.mrf.mxu1 }
 0x20c   :  { %v1017_v7 = vadd.f32 %v1016_v36, %v3980_v32  ;;  %v1214_v55 = vadd.f32 %v1213_v50, %v4118_v0  ;;  %v4137_v4 = vadd.f32 %v3996_v43, %v1025_v56 }
 0x20e   :  { %v4126_v38 = vadd.f32 %v3996_v43, %v1017_v7 }
 0x210   :  { %v1215_v32 = vadd.f32 %v1214_v55, %v4126_v38 }
 0x212   :  { %v1216_v29 = vadd.f32 %v1215_v32, %v4132_v62 }
 0x214   :  { %v1217_v19 = vadd.f32 %v1216_v29, %v4137_v4 }
 0x215   :  { %v3281_v58 = vpop.f32.mrf.mxu1 }
 0x217   :  { %v1029_v63 = vpop.f32.mrf.mxu1 }
 0x218   :  { %v1030_v21 = vadd.f32 %v1029_v63, %v3982_v37  ;;  %v1233_v37 = vld [vmem:[%s5065_s7] sm:$0x1] }
 0x219   :  { %v3282_v11 = vpop.f32.mrf.mxu1 }
 0x21a   :  { %v4141_v42 = vadd.f32 %v3996_v43, %v1030_v21 }
 0x21b   :  { %v1032_v49 = vpop.f32.mrf.mxu1 }
 0x21c   :  { %v1218_v6 = vadd.f32 %v1217_v19, %v4141_v42 }
 0x21e   :  { %v1226_v27 = vrot.slane %v1218_v6, 4 }
 0x220   :  { %v1227_v8 = vadd.f32 %v1226_v27, %v1218_v6 }
 0x222   :  { %v1228_v10 = vrot.slane %v1227_v8, 2 }
 0x224   :  { %v1229_v13 = vadd.f32 %v1228_v10, %v1227_v8 }
 0x226   :  { %v1230_v15 = vrot.slane %v1229_v13, 1 }
 0x228   :  { %v1231_v17 = vadd.f32 %v1230_v15, %v1229_v13 }
 0x22a   :  { %v1232_v43 = vmul.f32 0.005, %v1231_v17 }
 0x22c   :  { %v1234_v9 = vmul.f32 %v1233_v37, %v1232_v43 }
 0x22e   :  { %v4153_v22 = vrot.slane %v1234_v9, %v1238_v20 }
 0x230   :  { %v4157_v60 = vsub.f32 %v4003_v48, %v4153_v22  ;;  %v4161_v25 = vsub.f32 %v3999_v45, %v4153_v22  ;;  %v4165_v26 = vsub.f32 %v4008_v31, %v4153_v22  ;;  %v4173_v34 = vsub.f32 %v4015_v59, %v4153_v22 }
 0x231   :  { %v4177_v48 = vsub.f32 %v4018_v61, %v4153_v22  ;;  %v4183_v31 = vsub.f32 %v4022_v1, %v4153_v22  ;;  %v4189_v59 = vsub.f32 %v4028_v5, %v4153_v22  ;;  %v4195_v41 = vsub.f32 %v4035_v40, %v4153_v22 }
 0x232   :  { %v1305_v28 = vmul.f32 %v4157_v60, %v4157_v60  ;;  %v1306_v30 = vmul.f32 %v4161_v25, %v4161_v25  ;;  %v1307_v45 = vmul.f32 %v4165_v26, %v4165_v26  ;;  %v1308_v16 = vmul.f32 %v4173_v34, %v4173_v34 }
 0x233   :  { %v1309_v61 = vmul.f32 %v4177_v48, %v4177_v48  ;;  %v1310_v1 = vmul.f32 %v4183_v31, %v4183_v31  ;;  %v4201_v47 = vsub.f32 %v4038_v12, %v4153_v22  ;;  %v1311_v5 = vmul.f32 %v4189_v59, %v4189_v59 }
 0x234   :  { %v1337_v36 = vadd.f32 %v1306_v30, %v1305_v28  ;;  %v4207_v54 = vsub.f32 %v4042_v18, %v4153_v22  ;;  %v1312_v40 = vmul.f32 %v4195_v41, %v4195_v41  ;;  %v4213_v32 = vsub.f32 %v4048_v24, %v4153_v22 }
 0x235   :  { %v1313_v12 = vmul.f32 %v4201_v47, %v4201_v47  ;;  %v4219_v58 = vsub.f32 %v4055_v33, %v4153_v22  ;;  %v4225_v63 = vsub.f32 %v4058_v51, %v4153_v22  ;;  %v4231_v11 = vsub.f32 %v4065_v57, %v4153_v22 }
 0x236   :  { %v1338_v39 = vadd.f32 %v1337_v36, %v1307_v45  ;;  %v1314_v18 = vmul.f32 %v4207_v54, %v4207_v54  ;;  %v1315_v24 = vmul.f32 %v4213_v32, %v4213_v32  ;;  %v1255_v49 = vsub.f32 %v4074_v52, %v4153_v22 }
 0x237   :  { %v1316_v33 = vmul.f32 %v4219_v58, %v4219_v58  ;;  %v1317_v6 = vmul.f32 %v4225_v63, %v4225_v63  ;;  %v1256_v27 = vsub.f32 %v4084_v2, %v4153_v22  ;;  %v1318_v8 = vmul.f32 %v4231_v11, %v4231_v11 }
 0x238   :  { %v1339_v7 = vadd.f32 %v1338_v39, %v1308_v16  ;;  %v4245_v57 = vsub.f32 %v4087_v35, %v4153_v22  ;;  %v1319_v13 = vmul.f32 %v1255_v49, %v1255_v49  ;;  %v4249_v52 = vsub.f32 %v4094_v3, %v4153_v22 }
 0x239   :  { %v1320_v15 = vmul.f32 %v1256_v27, %v1256_v27  ;;  %v4253_v37 = vsub.f32 %v4103_v46, %v4153_v22  ;;  %v4259_v35 = vsub.f32 %v4115_v23, %v4153_v22  ;;  %v4265_v3 = vsub.f32 %v4118_v0, %v4153_v22 }
 0x23a   :  { %v1340_v44 = vadd.f32 %v1339_v7, %v1309_v61  ;;  %v1321_v2 = vmul.f32 %v4245_v57, %v4245_v57  ;;  %v1322_v9 = vmul.f32 %v4249_v52, %v4249_v52  ;;  %v4271_v45 = vsub.f32 %v4126_v38, %v4153_v22 }
 0x23b   :  { %v1323_v46 = vmul.f32 %v4253_v37, %v4253_v37  ;;  %v1324_v23 = vmul.f32 %v4259_v35, %v4259_v35  ;;  %v4277_v16 = vsub.f32 %v4132_v62, %v4153_v22  ;;  %v1325_v0 = vmul.f32 %v4265_v3, %v4265_v3 }
 0x23c   :  { %v1341_v50 = vadd.f32 %v1340_v44, %v1310_v1  ;;  %v4283_v61 = vsub.f32 %v4137_v4, %v4153_v22  ;;  %v1326_v38 = vmul.f32 %v4271_v45, %v4271_v45  ;;  %v1265_v1 = vsub.f32 %v4141_v42, %v4153_v22  ;;  %v4298_v22 = vld [vmem:[%s5066_s5] ss:$0 sm:$0xff] }
 0x23d   :  { %v1327_v44 = vmul.f32 %v4277_v16, %v4277_v16 }
 0x23e   :  { %v1342_v55 = vadd.f32 %v1341_v50, %v1311_v5  ;;  %v1328_v5 = vmul.f32 %v4283_v61, %v4283_v61 }
 0x240   :  { %v1343_v56 = vadd.f32 %v1342_v55, %v1312_v40  ;;  %v1329_v40 = vmul.f32 %v1265_v1, %v1265_v1 }
 0x242   :  { %v1344_v29 = vadd.f32 %v1343_v56, %v1313_v12 }
 0x244   :  { %v1345_v21 = vadd.f32 %v1344_v29, %v1314_v18 }
 0x246   :  { %v1346_v19 = vadd.f32 %v1345_v21, %v1315_v24 }
 0x248   :  { %v1347_v51 = vadd.f32 %v1346_v19, %v1316_v33 }
 0x24a   :  { %v1348_v10 = vadd.f32 %v1347_v51, %v1317_v6 }
 0x24c   :  { %v1349_v14 = vadd.f32 %v1348_v10, %v1318_v8 }
 0x24e   :  { %v1350_v17 = vadd.f32 %v1349_v14, %v1319_v13  ;;  %v4309_v13 = vld [vmem:[%s5067_s6] ss:$0 sm:$0xff] }
 0x250   :  { %v1351_v43 = vadd.f32 %v1350_v17, %v1320_v15 }
 0x252   :  { %v1352_v28 = vadd.f32 %v1351_v43, %v1321_v2 }
 0x254   :  { %v1353_v30 = vadd.f32 %v1352_v28, %v1322_v9 }
 0x256   :  { %v1354_v36 = vadd.f32 %v1353_v30, %v1323_v46 }
 0x258   :  { %v1355_v39 = vadd.f32 %v1354_v36, %v1324_v23 }
 0x25a   :  { %v1356_v7 = vadd.f32 %v1355_v39, %v1325_v0 }
 0x25c   :  { %v1357_v62 = vadd.f32 %v1356_v7, %v1326_v38 }
 0x25e   :  { %v1358_v50 = vadd.f32 %v1357_v62, %v1327_v44 }
 0x260   :  { %v1359_v55 = vadd.f32 %v1358_v50, %v1328_v5 }
 0x262   :  { %v1360_v12 = vadd.f32 %v1359_v55, %v1329_v40 }
 0x264   :  { %v1368_v4 = vrot.slane %v1360_v12, 4 }
 0x266   :  { %v1369_v56 = vadd.f32 %v1368_v4, %v1360_v12 }
 0x268   :  { %v1370_v18 = vrot.slane %v1369_v56, 2 }
 0x26a   :  { %v1371_v29 = vadd.f32 %v1370_v18, %v1369_v56 }
 0x26c   :  { %v1372_v24 = vrot.slane %v1371_v29, 1 }
 0x26e   :  { %v1373_v21 = vadd.f32 %v1372_v24, %v1371_v29 }
 0x270   :  { %v1374_v33 = vmul.f32 0.005, %v1373_v21 }
 0x272   :  { %v1375_v19 = vadd.f32 1e-05, %v1374_v33 }
 0x274   :  { %3479 = vrsqrt.f32 %v1375_v19 }
 0x281   :  { %v4293_v42 = vpop.eup %3479 }
 0x282   :  { %v1401_v6 = vmul.f32 %v4293_v42, %v1265_v1  ;;  %v1402_v51 = vmul.f32 0.0, %v4293_v42  ;;  %v1377_v8 = vmul.f32 %v4293_v42, %v4157_v60  ;;  %v1378_v10 = vmul.f32 %v4293_v42, %v4161_v25 }
 0x283   :  { %v1391_v14 = vmul.f32 %v4293_v42, %v1255_v49  ;;  %v1392_v15 = vmul.f32 %v4293_v42, %v1256_v27  ;;  %v1379_v17 = vmul.f32 %v4293_v42, %v4165_v26  ;;  %v1380_v2 = vmul.f32 %v4293_v42, %v4173_v34 }
 0x284   :  { %v1441_v60 = vmul.f32 %v4298_v22, %v1402_v51  ;;  %v1416_v43 = vmul.f32 %v4298_v22, %v1377_v8  ;;  %v1417_v25 = vmul.f32 %v4298_v22, %v1378_v10  ;;  %v1381_v9 = vmul.f32 %v4293_v42, %v4177_v48 }
 0x285   :  { %v1430_v28 = vmul.f32 %v4298_v22, %v1391_v14  ;;  %v1431_v49 = vmul.f32 %v4298_v22, %v1392_v15  ;;  %v1418_v27 = vmul.f32 %v4298_v22, %v1379_v17  ;;  %v1419_v26 = vmul.f32 %v4298_v22, %v1380_v2 }
 0x286   :  { %v1480_v46 = vadd.f32 %v4309_v13, %v1441_v60  ;;  %v1455_v34 = vadd.f32 %v4309_v13, %v1416_v43  ;;  %v1456_v30 = vadd.f32 %v4309_v13, %v1417_v25  ;;  %v1382_v23 = vmul.f32 %v4293_v42, %v4183_v31 }
 0x287   :  { %v1469_v36 = vadd.f32 %v4309_v13, %v1430_v28  ;;  %v1470_v48 = vadd.f32 %v4309_v13, %v1431_v49  ;;  %v1457_v0 = vadd.f32 %v4309_v13, %v1418_v27  ;;  %v1458_v39 = vadd.f32 %v4309_v13, %v1419_v26 }
 0x288   :  { %v1512_v38 = vmax.f32 %v1480_v46, 0.0  ;;  %v1487_v7 = vmax.f32 %v1455_v34, 0.0  ;;  %v1488_v1 = vmax.f32 %v1456_v30, 0.0  ;;  %v1420_v44 = vmul.f32 %v4298_v22, %v1381_v9 }
 0x289   :  { %v1501_v62 = vmax.f32 %v1469_v36, 0.0  ;;  %v1502_v5 = vmax.f32 %v1470_v48, 0.0  ;;  %v1489_v50 = vmax.f32 %v1457_v0, 0.0  ;;  %v1490_v40 = vmax.f32 %v1458_v39, 0.0 }
 0x28a   :  { %v4336_v55 = vpack.c.bf16 %v1512_v38, %v1512_v38  ;;  %v4338_v31 = vpack.c.bf16 %v1488_v1, %v1487_v7  ;;  %v1421_v12 = vmul.f32 %v4298_v22, %v1382_v23  ;;  %v1459_v4 = vadd.f32 %v4309_v13, %v1420_v44 }
 0x28b   :  { %v4342_v56 = vpack.c.bf16 %v1502_v5, %v1501_v62  ;;  %v4344_v18 = vpack.c.bf16 %v1490_v40, %v1489_v50  ;;  %v1389_v29 = vmul.f32 %v4293_v42, %v4225_v63  ;;  %v1390_v24 = vmul.f32 %v4293_v42, %v4231_v11 }
 0x28c   :  { %3031 = vmatprep.subr.bf16.mxu0 %v4336_v55  ;;  %3303 = vmatprep.mubr.bf16.mxu1 %v4338_v31  ;;  %v1460_v21 = vadd.f32 %v4309_v13, %v1421_v12  ;;  %v1491_v33 = vmax.f32 %v1459_v4, 0.0  ;;  %v1387_v19 = vmul.f32 %v4293_v42, %v4213_v32  ;;  %v1388_v51 = vmul.f32 %v4293_v42, %v4219_v58 }
 0x28d   :  { %3032 = vmatpush3.bf16.msra.mxu0 %v4342_v56  ;;  %3304 = vmatmul.mubr.bf16.vlgmr.msra.gmra.mxu1 %v4344_v18  ;;  %v1428_v63 = vmul.f32 %v4298_v22, %v1389_v29  ;;  %v1429_v11 = vmul.f32 %v4298_v22, %v1390_v24  ;;  %v1383_v8 = vmul.f32 %v4293_v42, %v4189_v59 }
 0x28e   :  { %3033 = vmatprep.subr.bf16.mxu0 %v4336_v55  ;;  %v1492_v10 = vmax.f32 %v1460_v21, 0.0  ;;  %v1426_v14 = vmul.f32 %v4298_v22, %v1387_v19  ;;  %v1427_v32 = vmul.f32 %v4298_v22, %v1388_v51  ;;  %v1384_v58 = vmul.f32 %v4293_v42, %v4195_v41 }
 0x28f   :  { %v1467_v15 = vadd.f32 %v4309_v13, %v1428_v63  ;;  %v1468_v17 = vadd.f32 %v4309_v13, %v1429_v11  ;;  %v1422_v2 = vmul.f32 %v4298_v22, %v1383_v8  ;;  %v1440_v60 = vmul.f32 %v4298_v22, %v1401_v6 }
 0x290   :  { %v4372_v43 = vpack.c.bf16 %v1492_v10, %v1491_v33  ;;  %v1465_v59 = vadd.f32 %v4309_v13, %v1426_v14  ;;  %v1466_v25 = vadd.f32 %v4309_v13, %v1427_v32  ;;  %v1423_v9 = vmul.f32 %v4298_v22, %v1384_v58 }
 0x291   :  { %v1499_v28 = vmax.f32 %v1467_v15, 0.0  ;;  %v1500_v49 = vmax.f32 %v1468_v17, 0.0  ;;  %v1461_v41 = vadd.f32 %v4309_v13, %v1422_v2  ;;  %v1479_v27 = vadd.f32 %v4309_v13, %v1440_v60 }
 0x292   :  { %3307 = vmatprep.mubr.bf16.mxu1 %v4372_v43  ;;  %v1497_v26 = vmax.f32 %v1465_v59, 0.0  ;;  %v1498_v46 = vmax.f32 %v1466_v25, 0.0  ;;  %v1462_v6 = vadd.f32 %v4309_v13, %v1423_v9  ;;  %v1385_v34 = vmul.f32 %v4293_v42, %v4201_v47 }
 0x293   :  { %v1525_v30 = vpack.c.bf16 %v1500_v49, %v1499_v28  ;;  %v1493_v23 = vmax.f32 %v1461_v41, 0.0  ;;  %v1511_v36 = vmax.f32 %v1479_v27, 0.0  ;;  %v1386_v48 = vmul.f32 %v4293_v42, %v4207_v54 }
 0x294   :  { %v1524_v0 = vpack.c.bf16 %v1498_v46, %v1497_v26  ;;  %v1494_v39 = vmax.f32 %v1462_v6, 0.0  ;;  %v1424_v7 = vmul.f32 %v4298_v22, %v1385_v34  ;;  %v1399_v1 = vmul.f32 %v4293_v42, %v4277_v16  ;;  %v3593_v46 = vld [vmem:[%s5060_s0 + $0x30] ss:$8 sps:$4 sm:$0xff]   ;;  %v3594_v6 = vld [vmem:[%s5060_s0 + $0x44] ss:$8 sps:$4 sm:$0xff]  }
 0x295   :  { %3034 = vmatpush3.bf16.msra.mxu0 %v1525_v30  ;;  %v4388_v44 = vpack.c.bf16 %v1512_v38, %v1511_v36  ;;  %v1425_v62 = vmul.f32 %v4298_v22, %v1386_v48  ;;  %v1400_v47 = vmul.f32 %v4293_v42, %v4283_v61  ;;  %v1397_v5 = vmul.f32 %v4293_v42, %v4265_v3  ;;  %v3595_v36 = vld [vmem:[%s5060_s0 + $0x40] ss:$8 sps:$4 sm:$0xff]   ;;  %v3596_v48 = vld [vmem:[%s5060_s0 + $0x54] ss:$8 sps:$4 sm:$0xff]  }
 0x296   :  { %3035 = vmatprep.subr.bf16.mxu0 %v4336_v55  ;;  %v1522_v54 = vpack.c.bf16 %v1494_v39, %v1493_v23  ;;  %v1463_v50 = vadd.f32 %v4309_v13, %v1424_v7  ;;  %v1438_v40 = vmul.f32 %v4298_v22, %v1399_v1  ;;  %v1398_v16 = vmul.f32 %v4293_v42, %v4271_v45  ;;  %v3599_v39 = vld [vmem:[%s5060_s0 + $0x60] ss:$8 sps:$4 sm:$0xff]   ;;  %v3600_v7 = vld [vmem:[%s5060_s0 + $0x74] ss:$8 sps:$4 sm:$0xff]  }
 0x297   :  { %v1464_v38 = vadd.f32 %v4309_v13, %v1425_v62  ;;  %v1439_v12 = vmul.f32 %v4298_v22, %v1400_v47  ;;  %v1436_v4 = vmul.f32 %v4298_v22, %v1397_v5  ;;  %v1395_v61 = vmul.f32 %v4293_v42, %v4253_v37  ;;  %v3471_v1 = vld [vmem:[%s5068_s8 + $0x38] sm:$0xff]   ;;  %v3602_v47 = vld [vmem:[%s5060_s0 + $0x84] ss:$8 sps:$4 sm:$0xff]  }
 0x298   :  { %3308 = vmatmul.mubr.bf16.gmra.mxu1 %v1522_v54  ;;  %v1495_v3 = vmax.f32 %v1463_v50, 0.0  ;;  %v1477_v29 = vadd.f32 %v4309_v13, %v1438_v40  ;;  %v1437_v24 = vmul.f32 %v4298_v22, %v1398_v16  ;;  %v1396_v21 = vmul.f32 %v4293_v42, %v4259_v35  ;;  %3335 = vmatprep.subr.bf16.mxu1 %v3471_v1  ;;  %v3601_v62 = vld [vmem:[%s5060_s0 + $0x70] ss:$8 sps:$4 sm:$0xff]   ;;  %v3473_v5 = vld [vmem:[%s5068_s8 + $0x28] sm:$0xff]   ;;  %v3604_v40 = vld [vmem:[%s5060_s0 + $0x94] ss:$8 sps:$4 sm:$0xff]  }
 0x299   :  { %3036 = vmatpush3.bf16.msra.mxu0 %v1524_v0  ;;  %v1496_v45 = vmax.f32 %v1464_v38, 0.0  ;;  %v1478_v33 = vadd.f32 %v4309_v13, %v1439_v12  ;;  %v1475_v19 = vadd.f32 %v4309_v13, %v1436_v4  ;;  %v1434_v51 = vmul.f32 %v4298_v22, %v1395_v61  ;;  %3336 = vmatpush3.bf16.msra.mxu1 %v3471_v1  ;;  %v3603_v50 = vld [vmem:[%s5060_s0 + $0x80] ss:$8 sps:$4 sm:$0xff]   ;;  %v3475_v16 = vld [vmem:[%s5068_s8 + $0x18] sm:$0xff]   ;;  %v3606_v12 = vld [vmem:[%s5060_s0 + $0xa4] ss:$8 sps:$4 sm:$0xff]  }
 0x29a   :  { %3037 = vmatprep.subr.bf16.mxu0 %v4388_v44  ;;  %v1509_v37 = vmax.f32 %v1477_v29, 0.0  ;;  %v1476_v63 = vadd.f32 %v4309_v13, %v1437_v24  ;;  %v1435_v11 = vmul.f32 %v4298_v22, %v1396_v21  ;;  %v1393_v8 = vmul.f32 %v4293_v42, %v4245_v57  ;;  %v3605_v38 = vld [vmem:[%s5060_s0 + $0x90] ss:$8 sps:$4 sm:$0xff]   ;;  %v3477_v61 = vld [vmem:[%s5068_s8 + $0x8] sm:$0xff]   ;;  %v3608_v29 = vld [vmem:[%s5060_s0 + $0xb4] ss:$8 sps:$4 sm:$0xff]  }
 0x29b   :  { %v1523_v10 = vpack.c.bf16 %v1496_v45, %v1495_v3  ;;  %v1510_v35 = vmax.f32 %v1478_v33, 0.0  ;;  %v1507_v14 = vmax.f32 %v1475_v19, 0.0  ;;  %v1473_v32 = vadd.f32 %v4309_v13, %v1434_v51  ;;  %v3476_v4 = vld [vmem:[%s5068_s8 + $0x10] sm:$0xff]   ;;  %v3607_v3 = vld [vmem:[%s5060_s0 + $0xa0] ss:$8 sps:$4 sm:$0xff]  }
 0x29c   :  { %v1508_v58 = vmax.f32 %v1476_v63, 0.0  ;;  %v1474_v15 = vadd.f32 %v4309_v13, %v1435_v11  ;;  %v1394_v17 = vmul.f32 %v4293_v42, %v4249_v52  ;;  %v1432_v2 = vmul.f32 %v4298_v22, %v1393_v8  ;;  %v3478_v24 = vld [vmem:[%s5068_s8] sm:$0xff]   ;;  %v3609_v21 = vld [vmem:[%s5060_s0 + $0xb0] ss:$8 sps:$4 sm:$0xff]   ;;  %v3612_v19 = vld [vmem:[%s5060_s0 + $0xd4] ss:$8 sps:$4 sm:$0xff]  }
 0x29d   :  { %3311 = vmatprep.mubr.bf16.mxu1 %v1523_v10  ;;  %3038 = vmatpush3.bf16.msra.mxu0 %v1523_v10  ;;  %v1530_v60 = vpack.c.bf16 %v1510_v35, %v1509_v37  ;;  %v1505_v9 = vmax.f32 %v1473_v32, 0.0  ;;  %v3610_v45 = vld [vmem:[%s5060_s0 + $0xc4] ss:$8 sps:$4 sm:$0xff]   ;;  %v3611_v33 = vld [vmem:[%s5060_s0 + $0xc0] ss:$8 sps:$4 sm:$0xff]  }
 0x29e   :  { %v1529_v59 = vpack.c.bf16 %v1508_v58, %v1507_v14  ;;  %v1433_v25 = vmul.f32 %v4298_v22, %v1394_v17  ;;  %v1471_v57 = vadd.f32 %v4309_v13, %v1432_v2  ;;  %v1506_v28 = vmax.f32 %v1474_v15, 0.0  ;;  %v3587_v22 = vld [vmem:[%s5060_s0] ss:$8 sps:$4 sm:$0xff]   ;;  %v3613_v51 = vld [vmem:[%s5060_s0 + $0xd0] ss:$8 sps:$4 sm:$0xff]  }
 0x29f   :  { %3039 = vmatprep.subr.bf16.mxu0 %v1530_v60  ;;  %v3614_v37 = vld [vmem:[%s5060_s0 + $0xe4] ss:$8 sps:$4 sm:$0xff]   ;;  %v3615_v63 = vld [vmem:[%s5060_s0 + $0xe0] ss:$8 sps:$4 sm:$0xff]   ;;  %v3616_v11 = vld [vmem:[%s5060_s0 + $0xf4] ss:$8 sps:$4 sm:$0xff]  }
 0x2a0   :  { %3312 = vmatmul.mubr.bf16.gmra.mxu1 %v1524_v0  ;;  %v1472_v49 = vadd.f32 %v4309_v13, %v1433_v25  ;;  %v1503_v52 = vmax.f32 %v1471_v57, 0.0  ;;  %v1528_v41 = vpack.c.bf16 %v1506_v28, %v1505_v9  ;;  %v3588_v13 = vld [vmem:[%s5060_s0 + $0x14] ss:$8 sps:$4 sm:$0xff]   ;;  %v3598_v0 = vld [vmem:[%s5060_s0 + $0x64] ss:$8 sps:$4 sm:$0xff]  }
 0x2a1   :  { %3040 = vmatpush3.bf16.msra.mxu0 %v1522_v54  ;;  %3315 = vmatprep.mubr.bf16.mxu1 %v1525_v30  ;;  %v3474_v54 = vld [vmem:[%s5068_s8 + $0x20] sm:$0xff]   ;;  %v3617_v8 = vld [vmem:[%s5060_s0 + $0xf0] ss:$8 sps:$4 sm:$0xff]  }
 0x2a2   :  { %3041 = vmatprep.subr.bf16.mxu0 %v1529_v59  ;;  %v1504_v42 = vmax.f32 %v1472_v49, 0.0 }
 0x2a4   :  { %v1527_v27 = vpack.c.bf16 %v1504_v42, %v1503_v52 }
 0x2a5   :  { %3042 = vmatpush3.bf16.msra.mxu0 %v4372_v43  ;;  %v3592_v43 = vld [vmem:[%s5060_s0 + $0x34] ss:$8 sps:$4 sm:$0xff]  }
 0x2a6   :  { %3043 = vmatprep.subr.bf16.mxu0 %v1528_v41 }
 0x2a8   :  { %3316 = vmatmul.mubr.bf16.gmra.mxu1 %v4342_v56  ;;  %v3589_v56 = vld [vmem:[%s5060_s0 + $0x10] ss:$8 sps:$4 sm:$0xff]  }
 0x2a9   :  { %3044 = vmatpush3.bf16.msra.mxu0 %v4344_v18  ;;  %3319 = vmatprep.mubr.bf16.mxu1 %v1527_v27  ;;  %v3591_v18 = vld [vmem:[%s5060_s0 + $0x20] ss:$8 sps:$4 sm:$0xff]  }
 0x2aa   :  { %3045 = vmatprep.subr.bf16.mxu0 %v1527_v27 }
 0x2ad   :  { %3046 = vmatpush3.bf16.msra.mxu0 %v4338_v31  ;;  %v3590_v31 = vld [vmem:[%s5060_s0 + $0x24] ss:$8 sps:$4 sm:$0xff]  }
 0x2b0   :  { %1568 = vmatmul.mubr.bf16.vlgmr.msra.gmra.mxu0 %v3587_v22  ;;  %3320 = vmatmul.mubr.bf16.gmra.mxu1 %v1528_v41 }
 0x2b1   :  { %3323 = vmatprep.mubr.bf16.mxu1 %v1529_v59  ;;  %1575 = vmatprep.mubr.bf16.mxu0 %v3588_v13 }
 0x2b8   :  { %1576 = vmatmul.mubr.bf16.gmra.mxu0 %v3589_v56  ;;  %3324 = vmatmul.mubr.bf16.gmra.mxu1 %v1530_v60 }
 0x2b9   :  { %3327 = vmatprep.mubr.bf16.mxu1 %v4388_v44  ;;  %1583 = vmatprep.mubr.bf16.mxu0 %v3590_v31  ;;  %v3472_v44 = vld [vmem:[%s5068_s8 + $0x30] sm:$0xff]  }
 0x2ba   :  { %3337 = vmatprep.subr.bf16.mxu1 %v3472_v44 }
 0x2bb   :  { %3338 = vmatpush3.bf16.msra.mxu1 %v3472_v44 }
 0x2bc   :  { %3339 = vmatprep.subr.bf16.mxu1 %v3473_v5 }
 0x2bf   :  { %3340 = vmatpush3.bf16.msra.mxu1 %v3473_v5 }
 0x2c0   :  { %1584 = vmatmul.mubr.bf16.gmra.mxu0 %v3591_v18  ;;  %3328 = vmatmul.mubr.bf16.gmra.mxu1 %v4336_v55 }
 0x2c1   :  { %3331 = vmatprep.mubr.bf16.mxu1 %v4336_v55  ;;  %1591 = vmatprep.mubr.bf16.mxu0 %v3592_v43 }
 0x2c2   :  { %3341 = vmatprep.subr.bf16.mxu1 %v3474_v54 }
 0x2c3   :  { %3342 = vmatpush3.bf16.msra.mxu1 %v3474_v54 }
 0x2c4   :  { %3343 = vmatprep.subr.bf16.mxu1 %v3475_v16 }
 0x2c7   :  { %3344 = vmatpush3.bf16.msra.mxu1 %v3475_v16 }
 0x2c8   :  { %1592 = vmatmul.mubr.bf16.gmra.mxu0 %v3593_v46  ;;  %3332 = vmatmul.mubr.bf16.gmra.mxu1 %v4336_v55  ;;  %v3597_v55 = vld [vmem:[%s5060_s0 + $0x50] ss:$8 sps:$4 sm:$0xff]  }
 0x2c9   :  { %v3285_v26 = vpop.f32.mrf.mxu1  ;;  %1599 = vmatprep.mubr.bf16.mxu0 %v3594_v6  ;;  %3345 = vmatprep.subr.bf16.mxu1 %v3476_v4 }
 0x2cb   :  { %v1045_v34 = vpop.f32.mrf.mxu1  ;;  %3346 = vmatpush3.bf16.msra.mxu1 %v3476_v4 }
 0x2cc   :  { %3347 = vmatprep.subr.bf16.mxu1 %v3477_v61 }
 0x2cd   :  { %v3286_v30 = vpop.f32.mrf.mxu1 }
 0x2cf   :  { %v1048_v23 = vpop.f32.mrf.mxu1  ;;  %3348 = vmatpush3.bf16.msra.mxu1 %v3477_v61 }
 0x2d0   :  { %1600 = vmatmul.mubr.bf16.gmra.mxu0 %v3595_v36  ;;  %3349 = vmatprep.subr.bf16.mxu1 %v3478_v24 }
 0x2d1   :  { %1607 = vmatprep.mubr.bf16.mxu0 %v3596_v48 }
 0x2d3   :  { %3350 = vmatpush3.bf16.msra.mxu1 %v3478_v24 }
 0x2d8   :  { %1608 = vmatmul.mubr.bf16.gmra.mxu0 %v3597_v55 }
 0x2d9   :  { %1615 = vmatprep.mubr.bf16.mxu0 %v3598_v0 }
 0x2e0   :  { %1616 = vmatmul.mubr.bf16.gmra.mxu0 %v3599_v39 }
 0x2e1   :  { %1623 = vmatprep.mubr.bf16.mxu0 %v3600_v7 }
 0x2e8   :  { %1624 = vmatmul.mubr.bf16.gmra.mxu0 %v3601_v62 }
 0x2e9   :  { %1631 = vmatprep.mubr.bf16.mxu0 %v3602_v47 }
 0x2f0   :  { %1632 = vmatmul.mubr.bf16.gmra.mxu0 %v3603_v50 }
 0x2f1   :  { %1639 = vmatprep.mubr.bf16.mxu0 %v3604_v40 }
 0x2f8   :  { %1640 = vmatmul.mubr.bf16.gmra.mxu0 %v3605_v38 }
 0x2f9   :  { %1647 = vmatprep.mubr.bf16.mxu0 %v3606_v12 }
 0x300   :  { %1648 = vmatmul.mubr.bf16.gmra.mxu0 %v3607_v3 }
 0x301   :  { %1655 = vmatprep.mubr.bf16.mxu0 %v3608_v29 }
 0x308   :  { %1656 = vmatmul.mubr.bf16.gmra.mxu0 %v3609_v21 }
 0x309   :  { %1663 = vmatprep.mubr.bf16.mxu0 %v3610_v45 }
 0x310   :  { %1664 = vmatmul.mubr.bf16.gmra.mxu0 %v3611_v33 }
 0x311   :  { %1671 = vmatprep.mubr.bf16.mxu0 %v3612_v19 }
 0x318   :  { %1672 = vmatmul.mubr.bf16.gmra.mxu0 %v3613_v51 }
 0x319   :  { %1679 = vmatprep.mubr.bf16.mxu0 %v3614_v37 }
 0x320   :  { %1680 = vmatmul.mubr.bf16.gmra.mxu0 %v3615_v63 }
 0x321   :  { %1687 = vmatprep.mubr.bf16.mxu0 %v3616_v11 }
 0x328   :  { %1688 = vmatmul.mubr.bf16.gmra.mxu0 %v3617_v8 }
 0x34d   :  { %v4550_v10 = vpop.f32.mrf.mxu1 }
 0x34f   :  { %v4552_v35 = vpop.f32.mrf.mxu1 }
 0x351   :  { %v4554_v14 = vpop.f32.mrf.mxu1 }
 0x353   :  { %v4556_v32 = vpop.f32.mrf.mxu1 }
 0x358   :  { %v4558_v58 = vpop.f32.mrf.mxu1 }
 0x35a   :  { %v4560_v15 = vpop.f32.mrf.mxu1 }
 0x35c   :  { %v4562_v17 = vpop.f32.mrf.mxu1 }
 0x35e   :  { %v4564_v2 = vpop.f32.mrf.mxu1 }
 0x360   :  { %v4566_v60 = vpop.f32.mrf.mxu1 }
 0x362   :  { %v4568_v59 = vpop.f32.mrf.mxu1 }
 0x364   :  { %v4570_v25 = vpop.f32.mrf.mxu1 }
 0x366   :  { %v4572_v57 = vpop.f32.mrf.mxu1 }
 0x368   :  { %v4574_v9 = vpop.f32.mrf.mxu1 }
 0x36a   :  { %v4576_v28 = vpop.f32.mrf.mxu1 }
 0x36c   :  { %v4578_v49 = vpop.f32.mrf.mxu1 }
 0x36e   :  { %v4580_v52 = vpop.f32.mrf.mxu1 }
 0x370   :  { %v3047_v42 = vpop.f32.mrf.mxu0  ;;  %v4582_v41 = vpop.f32.mrf.mxu1 }
 0x372   :  { %v3048_v27 = vpop.f32.mrf.mxu0  ;;  %v4584_v22 = vpop.f32.mrf.mxu1 }
 0x373   :  { %v3049_v43 = vadd.f32 %v3048_v27, %v3047_v42 }
 0x374   :  { %v3050_v13 = vpop.f32.mrf.mxu0  ;;  %v4586_v56 = vpop.f32.mrf.mxu1 }
 0x376   :  { %v3051_v31 = vpop.f32.mrf.mxu0  ;;  %v4588_v18 = vpop.f32.mrf.mxu1 }
 0x377   :  { %v3052_v26 = vadd.f32 %v3051_v31, %v3050_v13 }
 0x378   :  { %v3053_v46 = vpop.f32.mrf.mxu0  ;;  %v4590_v6 = vpop.f32.mrf.mxu1 }
 0x379   :  { %v1696_v34 = vpack.c.bf16 %v3052_v26, %v3049_v43 }
 0x37a   :  { %v3054_v30 = vpop.f32.mrf.mxu0  ;;  %v4592_v23 = vpop.f32.mrf.mxu1 }
 0x37b   :  { %3351 = vmatprep.mubr.bf16.mxu1 %v1696_v34  ;;  %v3055_v39 = vadd.f32 %v3054_v30, %v3053_v46 }
 0x37c   :  { %v3056_v36 = vpop.f32.mrf.mxu0  ;;  %v4594_v48 = vpop.f32.mrf.mxu1 }
 0x37e   :  { %v3057_v55 = vpop.f32.mrf.mxu0  ;;  %v4596_v0 = vpop.f32.mrf.mxu1 }
 0x37f   :  { %v3058_v7 = vadd.f32 %v3057_v55, %v3056_v36 }
 0x380   :  { %v3059_v1 = vpop.f32.mrf.mxu0  ;;  %v3329_v44 = vpop.f32.mrf.mxu1 }
 0x381   :  { %v1697_v62 = vpack.c.bf16 %v3058_v7, %v3055_v39 }
 0x382   :  { %v3060_v47 = vpop.f32.mrf.mxu0  ;;  %v4598_v5 = vpop.f32.mrf.mxu1 }
 0x383   :  { %3352 = vmatmul.mubr.bf16.vlgmr.msra.gmra.mxu1 %v1697_v62  ;;  %v3061_v38 = vadd.f32 %v3060_v47, %v3059_v1 }
 0x384   :  { %v3062_v54 = vpop.f32.mrf.mxu0  ;;  %v3330_v50 = vpop.f32.mrf.mxu1 }
 0x386   :  { %v3063_v40 = vpop.f32.mrf.mxu0  ;;  %v1925_v16 = vpop.f32.mrf.mxu1 }
 0x387   :  { %v3064_v12 = vadd.f32 %v3063_v40, %v3062_v54 }
 0x388   :  { %v3065_v4 = vpop.f32.mrf.mxu0  ;;  %v3333_v61 = vpop.f32.mrf.mxu1 }
 0x389   :  { %v1698_v3 = vpack.c.bf16 %v3064_v12, %v3061_v38 }
 0x38a   :  { %v3066_v29 = vpop.f32.mrf.mxu0  ;;  %v1938_v24 = vpop.f32.mrf.mxu1 }
 0x38b   :  { %3355 = vmatprep.mubr.bf16.mxu1 %v1698_v3  ;;  %v3067_v51 = vadd.f32 %v3066_v29, %v3065_v4 }
 0x38c   :  { %v3068_v21 = vpop.f32.mrf.mxu0  ;;  %v3334_v45 = vpop.f32.mrf.mxu1 }
 0x38e   :  { %v3069_v33 = vpop.f32.mrf.mxu0  ;;  %v1941_v19 = vpop.f32.mrf.mxu1 }
 0x38f   :  { %v3070_v37 = vadd.f32 %v3069_v33, %v3068_v21 }
 0x390   :  { %v3071_v63 = vpop.f32.mrf.mxu0 }
 0x391   :  { %v1699_v11 = vpack.c.bf16 %v3070_v37, %v3067_v51 }
 0x392   :  { %v3072_v8 = vpop.f32.mrf.mxu0 }
 0x393   :  { %3356 = vmatmul.mubr.bf16.gmra.mxu1 %v1699_v11  ;;  %v3073_v13 = vadd.f32 %v3072_v8, %v3071_v63 }
 0x394   :  { %v3074_v42 = vpop.f32.mrf.mxu0 }
 0x396   :  { %v3075_v27 = vpop.f32.mrf.mxu0 }
 0x397   :  { %v3076_v31 = vadd.f32 %v3075_v27, %v3074_v42 }
 0x398   :  { %v3077_v43 = vpop.f32.mrf.mxu0 }
 0x399   :  { %v1700_v26 = vpack.c.bf16 %v3076_v31, %v3073_v13 }
 0x39a   :  { %v3078_v46 = vpop.f32.mrf.mxu0 }
 0x39b   :  { %3359 = vmatprep.mubr.bf16.mxu1 %v1700_v26  ;;  %v3079_v36 = vadd.f32 %v3078_v46, %v3077_v43 }
 0x39c   :  { %v3080_v34 = vpop.f32.mrf.mxu0 }
 0x39e   :  { %v3081_v30 = vpop.f32.mrf.mxu0 }
 0x39f   :  { %v3082_v55 = vadd.f32 %v3081_v30, %v3080_v34 }
 0x3a0   :  { %v3083_v39 = vpop.f32.mrf.mxu0 }
 0x3a1   :  { %v1701_v7 = vpack.c.bf16 %v3082_v55, %v3079_v36 }
 0x3a2   :  { %v3084_v1 = vpop.f32.mrf.mxu0 }
 0x3a3   :  { %3360 = vmatmul.mubr.bf16.gmra.mxu1 %v1701_v7  ;;  %v3085_v47 = vadd.f32 %v3084_v1, %v3083_v39 }
 0x3a4   :  { %v3086_v44 = vpop.f32.mrf.mxu0 }
 0x3a6   :  { %v3087_v62 = vpop.f32.mrf.mxu0 }
 0x3a7   :  { %v3088_v54 = vadd.f32 %v3087_v62, %v3086_v44 }
 0x3a8   :  { %v3089_v50 = vpop.f32.mrf.mxu0 }
 0x3a9   :  { %v1702_v40 = vpack.c.bf16 %v3088_v54, %v3085_v47 }
 0x3aa   :  { %v3090_v16 = vpop.f32.mrf.mxu0 }
 0x3ab   :  { %3363 = vmatprep.mubr.bf16.mxu1 %v1702_v40  ;;  %v3091_v4 = vadd.f32 %v3090_v16, %v3089_v50 }
 0x3ac   :  { %v3092_v38 = vpop.f32.mrf.mxu0 }
 0x3ae   :  { %v3093_v12 = vpop.f32.mrf.mxu0 }
 0x3af   :  { %v3094_v61 = vadd.f32 %v3093_v12, %v3092_v38 }
 0x3b0   :  { %v3095_v3 = vpop.f32.mrf.mxu0 }
 0x3b1   :  { %v1703_v29 = vpack.c.bf16 %v3094_v61, %v3091_v4 }
 0x3b2   :  { %v3096_v24 = vpop.f32.mrf.mxu0 }
 0x3b3   :  { %3364 = vmatmul.mubr.bf16.gmra.mxu1 %v1703_v29  ;;  %v3097_v33 = vadd.f32 %v3096_v24, %v3095_v3 }
 0x3b4   :  { %v3098_v21 = vpop.f32.mrf.mxu0 }
 0x3b6   :  { %v3099_v45 = vpop.f32.mrf.mxu0 }
 0x3b7   :  { %v3100_v19 = vadd.f32 %v3099_v45, %v3098_v21 }
 0x3b8   :  { %v3101_v51 = vpop.f32.mrf.mxu0 }
 0x3b9   :  { %v1704_v37 = vpack.c.bf16 %v3100_v19, %v3097_v33 }
 0x3ba   :  { %v3102_v63 = vpop.f32.mrf.mxu0 }
 0x3bb   :  { %3367 = vmatprep.mubr.bf16.mxu1 %v1704_v37  ;;  %v3103_v42 = vadd.f32 %v3102_v63, %v3101_v51 }
 0x3bc   :  { %v3104_v11 = vpop.f32.mrf.mxu0 }
 0x3be   :  { %v3105_v8 = vpop.f32.mrf.mxu0 }
 0x3bf   :  { %v3106_v27 = vadd.f32 %v3105_v8, %v3104_v11 }
 0x3c0   :  { %v3107_v13 = vpop.f32.mrf.mxu0 }
 0x3c1   :  { %v1705_v31 = vpack.c.bf16 %v3106_v27, %v3103_v42 }
 0x3c2   :  { %v3108_v43 = vpop.f32.mrf.mxu0 }
 0x3c3   :  { %3368 = vmatmul.mubr.bf16.gmra.mxu1 %v1705_v31  ;;  %v3109_v34 = vadd.f32 %v3108_v43, %v3107_v13 }
 0x3c4   :  { %v3110_v26 = vpop.f32.mrf.mxu0 }
 0x3c6   :  { %v3111_v46 = vpop.f32.mrf.mxu0 }
 0x3c7   :  { %v3112_v30 = vadd.f32 %v3111_v46, %v3110_v26 }
 0x3c8   :  { %v3113_v36 = vpop.f32.mrf.mxu0 }
 0x3c9   :  { %v1706_v55 = vpack.c.bf16 %v3112_v30, %v3109_v34 }
 0x3ca   :  { %v3114_v39 = vpop.f32.mrf.mxu0 }
 0x3cb   :  { %3371 = vmatprep.mubr.bf16.mxu1 %v1706_v55  ;;  %v3115_v44 = vadd.f32 %v3114_v39, %v3113_v36 }
 0x3cc   :  { %v3116_v7 = vpop.f32.mrf.mxu0 }
 0x3ce   :  { %v3117_v1 = vpop.f32.mrf.mxu0 }
 0x3cf   :  { %v3118_v62 = vadd.f32 %v3117_v1, %v3116_v7 }
 0x3d0   :  { %v3119_v47 = vpop.f32.mrf.mxu0 }
 0x3d1   :  { %v1707_v54 = vpack.c.bf16 %v3118_v62, %v3115_v44 }
 0x3d2   :  { %v3120_v50 = vpop.f32.mrf.mxu0 }
 0x3d3   :  { %3372 = vmatmul.mubr.bf16.gmra.mxu1 %v1707_v54  ;;  %v3121_v38 = vadd.f32 %v3120_v50, %v3119_v47  ;;  %v4605_v47 = vld [vmem:[%s5069_s10] ss:$0 sm:$0xff] }
 0x3d4   :  { %v3122_v40 = vpop.f32.mrf.mxu0 }
 0x3d6   :  { %v3123_v16 = vpop.f32.mrf.mxu0 }
 0x3d7   :  { %v3124_v12 = vadd.f32 %v3123_v16, %v3122_v40 }
 0x3d8   :  { %v3125_v4 = vpop.f32.mrf.mxu0 }
 0x3d9   :  { %v1708_v61 = vpack.c.bf16 %v3124_v12, %v3121_v38 }
 0x3da   :  { %v3126_v3 = vpop.f32.mrf.mxu0 }
 0x3db   :  { %3375 = vmatprep.mubr.bf16.mxu1 %v1708_v61  ;;  %v3127_v21 = vadd.f32 %v3126_v3, %v3125_v4 }
 0x3dc   :  { %v3128_v29 = vpop.f32.mrf.mxu0 }
 0x3de   :  { %v3129_v24 = vpop.f32.mrf.mxu0 }
 0x3df   :  { %v3130_v45 = vadd.f32 %v3129_v24, %v3128_v29 }
 0x3e0   :  { %v3131_v19 = vpop.f32.mrf.mxu0 }
 0x3e1   :  { %v1709_v33 = vpack.c.bf16 %v3130_v45, %v3127_v21 }
 0x3e2   :  { %v3132_v51 = vpop.f32.mrf.mxu0 }
 0x3e3   :  { %3376 = vmatmul.mubr.bf16.gmra.mxu1 %v1709_v33  ;;  %v3133_v27 = vadd.f32 %v3132_v51, %v3131_v19 }
 0x3e4   :  { %v3134_v37 = vpop.f32.mrf.mxu0 }
 0x3e6   :  { %v3135_v63 = vpop.f32.mrf.mxu0 }
 0x3e7   :  { %v3136_v13 = vadd.f32 %v3135_v63, %v3134_v37 }
 0x3e8   :  { %v3137_v11 = vpop.f32.mrf.mxu0 }
 0x3e9   :  { %v1710_v43 = vpack.c.bf16 %v3136_v13, %v3133_v27 }
 0x3ea   :  { %v3138_v8 = vpop.f32.mrf.mxu0 }
 0x3eb   :  { %v3139_v26 = vadd.f32 %v3138_v8, %v3137_v11  ;;  %3379 = vmatprep.mubr.bf16.mxu1 %v1710_v43 }
 0x3ec   :  { %v3140_v42 = vpop.f32.mrf.mxu0 }
 0x3ee   :  { %v3141_v31 = vpop.f32.mrf.mxu0 }
 0x3ef   :  { %v3142_v46 = vadd.f32 %v3141_v31, %v3140_v42 }
 0x3f1   :  { %v1711_v34 = vpack.c.bf16 %v3142_v46, %v3139_v26 }
 0x3f3   :  { %3380 = vmatmul.mubr.bf16.gmra.mxu1 %v1711_v34 }
 0x443   :  { %v3353_v30 = vpop.f32.mrf.mxu1 }
 0x444   :  { %v2044_v40 = vadd.f32 %v3353_v30, %v4550_v10 }
 0x445   :  { %v2035_v36 = vpop.f32.mrf.mxu1 }
 0x446   :  { %v2036_v62 = vadd.f32 %v2035_v36, %v4552_v35  ;;  %v4617_v35 = vadd.f32 %v4605_v47, %v2044_v40 }
 0x447   :  { %v3354_v55 = vpop.f32.mrf.mxu1 }
 0x448   :  { %v4612_v16 = vadd.f32 %v4605_v47, %v2036_v62  ;;  %v2047_v4 = vadd.f32 %v3354_v55, %v4554_v14 }
 0x449   :  { %v2038_v39 = vpop.f32.mrf.mxu1 }
 0x44a   :  { %v2039_v44 = vadd.f32 %v2038_v39, %v4556_v32  ;;  %v4624_v24 = vadd.f32 %v4605_v47, %v2047_v4 }
 0x44c   :  { %v4608_v50 = vadd.f32 %v4605_v47, %v2039_v44 }
 0x44e   :  { %v2233_v32 = vadd.f32 %v4608_v50, %v4612_v16 }
 0x450   :  { %v2234_v3 = vadd.f32 %v2233_v32, %v4617_v35 }
 0x452   :  { %v2235_v45 = vadd.f32 %v2234_v3, %v4624_v24 }
 0x453   :  { %v3357_v7 = vpop.f32.mrf.mxu1 }
 0x454   :  { %v2060_v14 = vadd.f32 %v3357_v7, %v4558_v58 }
 0x455   :  { %v2051_v1 = vpop.f32.mrf.mxu1 }
 0x456   :  { %v2052_v61 = vadd.f32 %v2051_v1, %v4560_v15  ;;  %v4637_v37 = vadd.f32 %v4605_v47, %v2060_v14 }
 0x457   :  { %v3358_v54 = vpop.f32.mrf.mxu1 }
 0x458   :  { %v4627_v21 = vadd.f32 %v4605_v47, %v2052_v61  ;;  %v2063_v63 = vadd.f32 %v3358_v54, %v4562_v17 }
 0x459   :  { %v2054_v38 = vpop.f32.mrf.mxu1 }
 0x45a   :  { %v2055_v29 = vadd.f32 %v2054_v38, %v4564_v2  ;;  %v2236_v15 = vadd.f32 %v2235_v45, %v4627_v21  ;;  %v4644_v58 = vadd.f32 %v4605_v47, %v2063_v63 }
 0x45c   :  { %v4631_v33 = vadd.f32 %v4605_v47, %v2055_v29 }
 0x45e   :  { %v2237_v51 = vadd.f32 %v2236_v15, %v4631_v33 }
 0x460   :  { %v2238_v42 = vadd.f32 %v2237_v51, %v4637_v37 }
 0x462   :  { %v2239_v43 = vadd.f32 %v2238_v42, %v4644_v58 }
 0x463   :  { %v3361_v12 = vpop.f32.mrf.mxu1 }
 0x465   :  { %v2067_v10 = vpop.f32.mrf.mxu1 }
 0x466   :  { %v2068_v11 = vadd.f32 %v2067_v10, %v4568_v59  ;;  %v2076_v59 = vadd.f32 %v3361_v12, %v4566_v60 }
 0x467   :  { %v3362_v19 = vpop.f32.mrf.mxu1 }
 0x468   :  { %v4647_v31 = vadd.f32 %v4605_v47, %v2068_v11  ;;  %v4657_v30 = vadd.f32 %v4605_v47, %v2076_v59  ;;  %v2079_v36 = vadd.f32 %v3362_v19, %v4570_v25 }
 0x469   :  { %v2070_v2 = vpop.f32.mrf.mxu1 }
 0x46a   :  { %v2071_v27 = vadd.f32 %v2070_v2, %v4572_v57  ;;  %v2240_v46 = vadd.f32 %v2239_v43, %v4647_v31  ;;  %v4664_v1 = vadd.f32 %v4605_v47, %v2079_v36 }
 0x46c   :  { %v4651_v26 = vadd.f32 %v4605_v47, %v2071_v27 }
 0x46e   :  { %v2241_v34 = vadd.f32 %v2240_v46, %v4651_v26 }
 0x470   :  { %v2242_v39 = vadd.f32 %v2241_v34, %v4657_v30 }
 0x472   :  { %v2243_v62 = vadd.f32 %v2242_v39, %v4664_v1 }
 0x473   :  { %v3365_v8 = vpop.f32.mrf.mxu1 }
 0x474   :  { %v2092_v25 = vadd.f32 %v3365_v8, %v4574_v9 }
 0x475   :  { %v2083_v13 = vpop.f32.mrf.mxu1 }
 0x476   :  { %v2084_v55 = vadd.f32 %v2083_v13, %v4576_v28  ;;  %v4677_v12 = vadd.f32 %v4605_v47, %v2092_v25 }
 0x477   :  { %v3366_v17 = vpop.f32.mrf.mxu1 }
 0x478   :  { %v4667_v60 = vadd.f32 %v4605_v47, %v2084_v55  ;;  %v2095_v4 = vadd.f32 %v3366_v17, %v4578_v49 }
 0x479   :  { %v2086_v57 = vpop.f32.mrf.mxu1 }
 0x47a   :  { %v2087_v7 = vadd.f32 %v2086_v57, %v4580_v52  ;;  %v2244_v28 = vadd.f32 %v2243_v62, %v4667_v60  ;;  %v4684_v10 = vadd.f32 %v4605_v47, %v2095_v4  ;;  %v2271_v4 = vld [vmem:[%s5070_s13] sm:$0x1] }
 0x47c   :  { %v4671_v54 = vadd.f32 %v4605_v47, %v2087_v7 }
 0x47e   :  { %v2245_v52 = vadd.f32 %v2244_v28, %v4671_v54 }
 0x480   :  { %v2246_v3 = vadd.f32 %v2245_v52, %v4677_v12 }
 0x482   :  { %v2247_v45 = vadd.f32 %v2246_v3, %v4684_v10 }
 0x483   :  { %v3369_v44 = vpop.f32.mrf.mxu1 }
 0x484   :  { %v2108_v14 = vadd.f32 %v3369_v44, %v4582_v41 }
 0x485   :  { %v2099_v40 = vpop.f32.mrf.mxu1 }
 0x486   :  { %v2100_v61 = vadd.f32 %v2099_v40, %v4584_v22 }
 0x487   :  { %v3370_v38 = vpop.f32.mrf.mxu1 }
 0x488   :  { %v4687_v9 = vadd.f32 %v4605_v47, %v2100_v61  ;;  %v2111_v2 = vadd.f32 %v3370_v38, %v4586_v56 }
 0x489   :  { %v2102_v32 = vpop.f32.mrf.mxu1 }
 0x48a   :  { %v2103_v29 = vadd.f32 %v2102_v32, %v4588_v18  ;;  %v2248_v49 = vadd.f32 %v2247_v45, %v4687_v9  ;;  %v4697_v18 = vadd.f32 %v4605_v47, %v2108_v14  ;;  %v4703_v27 = vadd.f32 %v4605_v47, %v2111_v2 }
 0x48c   :  { %v4691_v19 = vadd.f32 %v4605_v47, %v2103_v29 }
 0x48e   :  { %v2249_v15 = vadd.f32 %v2248_v49, %v4691_v19 }
 0x490   :  { %v2250_v8 = vadd.f32 %v2249_v15, %v4697_v18 }
 0x492   :  { %v2251_v43 = vadd.f32 %v2250_v8, %v4703_v27 }
 0x493   :  { %v3373_v22 = vpop.f32.mrf.mxu1 }
 0x494   :  { %v2124_v56 = vadd.f32 %v3373_v22, %v4590_v6 }
 0x495   :  { %v2115_v51 = vpop.f32.mrf.mxu1 }
 0x496   :  { %v2116_v63 = vadd.f32 %v2115_v51, %v4592_v23  ;;  %v4717_v46 = vadd.f32 %v4605_v47, %v2124_v56 }
 0x497   :  { %v3374_v11 = vpop.f32.mrf.mxu1 }
 0x498   :  { %v4706_v41 = vadd.f32 %v4605_v47, %v2116_v63  ;;  %v2127_v34 = vadd.f32 %v3374_v11, %v4594_v48 }
 0x499   :  { %v2118_v42 = vpop.f32.mrf.mxu1 }
 0x49a   :  { %v2119_v13 = vadd.f32 %v2118_v42, %v4596_v0  ;;  %v2252_v23 = vadd.f32 %v2251_v43, %v4706_v41  ;;  %v4722_v55 = vadd.f32 %v4605_v47, %v2127_v34 }
 0x49c   :  { %v4711_v17 = vadd.f32 %v4605_v47, %v2119_v13 }
 0x49e   :  { %v2253_v59 = vadd.f32 %v2252_v23, %v4711_v17 }
 0x4a0   :  { %v2254_v36 = vadd.f32 %v2253_v59, %v4717_v46 }
 0x4a2   :  { %v2255_v44 = vadd.f32 %v2254_v36, %v4722_v55 }
 0x4a3   :  { %v3377_v57 = vpop.f32.mrf.mxu1 }
 0x4a5   :  { %v2131_v0 = vpop.f32.mrf.mxu1 }
 0x4a6   :  { %v2132_v39 = vadd.f32 %v2131_v0, %v4598_v5 }
 0x4a7   :  { %v3378_v7 = vpop.f32.mrf.mxu1 }
 0x4a8   :  { %v4726_v6 = vadd.f32 %v4605_v47, %v2132_v39 }
 0x4a9   :  { %v2134_v62 = vpop.f32.mrf.mxu1 }
 0x4aa   :  { %v2256_v40 = vadd.f32 %v2255_v44, %v4726_v6 }
 0x4ac   :  { %v2264_v25 = vrot.slane %v2256_v40, 4 }
 0x4ae   :  { %v2265_v48 = vadd.f32 %v2264_v25, %v2256_v40 }
 0x4b0   :  { %v2266_v28 = vrot.slane %v2265_v48, 2 }
 0x4b2   :  { %v2267_v38 = vadd.f32 %v2266_v28, %v2265_v48 }
 0x4b3   :  { %v3381_v39 = vpop.f32.mrf.mxu1 }
 0x4b4   :  { %v2268_v52 = vrot.slane %v2267_v38, 1 }
 0x4b5   :  { %v2147_v62 = vpop.f32.mrf.mxu1 }
 0x4b6   :  { %v2269_v32 = vadd.f32 %v2268_v52, %v2267_v38 }
 0x4b7   :  { %v3382_v48 = vpop.f32.mrf.mxu1 }
 0x4b8   :  { %v2270_v5 = vmul.f32 0.005, %v2269_v32 }
 0x4b9   :  { %v2150_v52 = vpop.f32.mrf.mxu1 }
 0x4ba   :  { %v2272_v61 = vmul.f32 %v2271_v4, %v2270_v5 }
 0x4bc   :  { %v4735_v47 = vrot.slane %v2272_v61, %v1238_v20 }
 0x4be   :  { %v4739_v3 = vsub.f32 %v4612_v16, %v4735_v47  ;;  %v4743_v29 = vsub.f32 %v4608_v50, %v4735_v47  ;;  %v4747_v45 = vsub.f32 %v4617_v35, %v4735_v47  ;;  %v4755_v20 = vsub.f32 %v4624_v24, %v4735_v47 }
 0x4bf   :  { %v4759_v16 = vsub.f32 %v4627_v21, %v4735_v47  ;;  %v4765_v35 = vsub.f32 %v4631_v33, %v4735_v47  ;;  %v4771_v24 = vsub.f32 %v4637_v37, %v4735_v47  ;;  %v4777_v2 = vsub.f32 %v4644_v58, %v4735_v47 }
 0x4c0   :  { %v2343_v14 = vmul.f32 %v4739_v3, %v4739_v3  ;;  %v2344_v53 = vmul.f32 %v4743_v29, %v4743_v29  ;;  %v2345_v50 = vmul.f32 %v4747_v45, %v4747_v45  ;;  %v2346_v22 = vmul.f32 %v4755_v20, %v4755_v20 }
 0x4c1   :  { %v2347_v21 = vmul.f32 %v4759_v16, %v4759_v16  ;;  %v2348_v33 = vmul.f32 %v4765_v35, %v4765_v35  ;;  %v4783_v11 = vsub.f32 %v4647_v31, %v4735_v47  ;;  %v2349_v37 = vmul.f32 %v4771_v24, %v4771_v24 }
 0x4c2   :  { %v2375_v49 = vadd.f32 %v2344_v53, %v2343_v14  ;;  %v4789_v42 = vsub.f32 %v4651_v26, %v4735_v47  ;;  %v2350_v58 = vmul.f32 %v4777_v2, %v4777_v2  ;;  %v4795_v43 = vsub.f32 %v4657_v30, %v4735_v47 }
 0x4c3   :  { %v2351_v31 = vmul.f32 %v4783_v11, %v4783_v11  ;;  %v4801_v23 = vsub.f32 %v4664_v1, %v4735_v47  ;;  %v4807_v34 = vsub.f32 %v4667_v60, %v4735_v47  ;;  %v4813_v36 = vsub.f32 %v4671_v54, %v4735_v47 }
 0x4c4   :  { %v2376_v15 = vadd.f32 %v2375_v49, %v2345_v50  ;;  %v2352_v26 = vmul.f32 %v4789_v42, %v4789_v42  ;;  %v2353_v30 = vmul.f32 %v4795_v43, %v4795_v43  ;;  %v4819_v7 = vsub.f32 %v4677_v12, %v4735_v47 }
 0x4c5   :  { %v2354_v1 = vmul.f32 %v4801_v23, %v4801_v23  ;;  %v2355_v60 = vmul.f32 %v4807_v34, %v4807_v34  ;;  %v4825_v40 = vsub.f32 %v4684_v10, %v4735_v47  ;;  %v2356_v54 = vmul.f32 %v4813_v36, %v4813_v36 }
 0x4c6   :  { %v2377_v51 = vadd.f32 %v2376_v15, %v2346_v22  ;;  %v4831_v28 = vsub.f32 %v4687_v9, %v4735_v47  ;;  %v2357_v12 = vmul.f32 %v4819_v7, %v4819_v7  ;;  %v4837_v32 = vsub.f32 %v4691_v19, %v4735_v47 }
 0x4c7   :  { %v2358_v10 = vmul.f32 %v4825_v40, %v4825_v40  ;;  %v2297_v5 = vsub.f32 %v4697_v18, %v4735_v47  ;;  %v2298_v14 = vsub.f32 %v4703_v27, %v4735_v47  ;;  %v2299_v19 = vsub.f32 %v4706_v41, %v4735_v47 }
 0x4c8   :  { %v2378_v63 = vadd.f32 %v2377_v51, %v2347_v21  ;;  %v2359_v9 = vmul.f32 %v4831_v28, %v4831_v28  ;;  %v2360_v53 = vmul.f32 %v4837_v32, %v4837_v32  ;;  %v2300_v15 = vsub.f32 %v4711_v17, %v4735_v47 }
 0x4c9   :  { %v2361_v49 = vmul.f32 %v2297_v5, %v2297_v5  ;;  %v2362_v18 = vmul.f32 %v2298_v14, %v2298_v14  ;;  %v2301_v51 = vsub.f32 %v4717_v46, %v4735_v47  ;;  %v2302_v27 = vsub.f32 %v4722_v55, %v4735_v47 }
 0x4ca   :  { %v2379_v8 = vadd.f32 %v2378_v63, %v2348_v33  ;;  %v2363_v33 = vmul.f32 %v2299_v19, %v2299_v19  ;;  %v2303_v41 = vsub.f32 %v4726_v6, %v4735_v47 }
 0x4cc   :  { %v2380_v13 = vadd.f32 %v2379_v8, %v2349_v37  ;;  %v2364_v37 = vmul.f32 %v2300_v15, %v2300_v15  ;;  %v2367_v17 = vmul.f32 %v2303_v41, %v2303_v41 }
 0x4ce   :  { %v2381_v56 = vadd.f32 %v2380_v13, %v2350_v58  ;;  %v2365_v58 = vmul.f32 %v2301_v51, %v2301_v51 }
 0x4d0   :  { %v2382_v59 = vadd.f32 %v2381_v56, %v2351_v31  ;;  %v2366_v31 = vmul.f32 %v2302_v27, %v2302_v27 }
 0x4d2   :  { %v2383_v57 = vadd.f32 %v2382_v59, %v2352_v26 }
 0x4d4   :  { %v2384_v0 = vadd.f32 %v2383_v57, %v2353_v30 }
 0x4d6   :  { %v2385_v44 = vadd.f32 %v2384_v0, %v2354_v1 }
 0x4d8   :  { %v2386_v25 = vadd.f32 %v2385_v44, %v2355_v60 }
 0x4da   :  { %v2387_v38 = vadd.f32 %v2386_v25, %v2356_v54 }
 0x4dc   :  { %v2388_v4 = vadd.f32 %v2387_v38, %v2357_v12 }
 0x4de   :  { %v2389_v61 = vadd.f32 %v2388_v4, %v2358_v10 }
 0x4e0   :  { %v2390_v50 = vadd.f32 %v2389_v61, %v2359_v9 }
 0x4e2   :  { %v2391_v22 = vadd.f32 %v2390_v50, %v2360_v53  ;;  %v4893_v50 = vld [vmem:[%s5072_s12] ss:$0 sm:$0xff] }
 0x4e4   :  { %v2392_v21 = vadd.f32 %v2391_v22, %v2361_v49 }
 0x4e6   :  { %v2393_v63 = vadd.f32 %v2392_v21, %v2362_v18 }
 0x4e8   :  { %v2394_v8 = vadd.f32 %v2393_v63, %v2363_v33 }
 0x4ea   :  { %v2395_v13 = vadd.f32 %v2394_v8, %v2364_v37 }
 0x4ec   :  { %v2396_v56 = vadd.f32 %v2395_v13, %v2365_v58 }
 0x4ee   :  { %v2397_v26 = vadd.f32 %v2396_v56, %v2366_v31 }
 0x4f0   :  { %v2398_v59 = vadd.f32 %v2397_v26, %v2367_v17 }
 0x4f2   :  { %v2406_v30 = vrot.slane %v2398_v59, 4 }
 0x4f4   :  { %v2407_v57 = vadd.f32 %v2406_v30, %v2398_v59 }
 0x4f6   :  { %v2408_v46 = vrot.slane %v2407_v57, 2 }
 0x4f8   :  { %v2409_v1 = vadd.f32 %v2408_v46, %v2407_v57 }
 0x4fa   :  { %v2410_v0 = vrot.slane %v2409_v1, 1 }
 0x4fc   :  { %v2411_v39 = vadd.f32 %v2410_v0, %v2409_v1 }
 0x4fe   :  { %v2412_v60 = vmul.f32 0.005, %v2411_v39 }
 0x500   :  { %v2413_v55 = vadd.f32 1e-05, %v2412_v60 }
 0x502   :  { %3481 = vrsqrt.f32 %v2413_v55 }
 0x50f   :  { %v3482_v44 = vpop.eup %3481 }
 0x510   :  { %v4859_v62 = vmul.f32 %v3482_v44, %v2297_v5  ;;  %v4861_v6 = vmul.f32 %v3482_v44, %v2298_v14  ;;  %v4863_v47 = vmul.f32 %v3482_v44, %v2299_v19  ;;  %v4865_v54 = vmul.f32 %v3482_v44, %v2300_v15  ;;  %v4880_v5 = vld [vmem:[%s5071_s11] ss:$0 sm:$0xff] }
 0x511   :  { %v4867_v25 = vmul.f32 %v3482_v44, %v2301_v51  ;;  %v4869_v48 = vmul.f32 %v3482_v44, %v2302_v27  ;;  %v4871_v12 = vmul.f32 %v3482_v44, %v2303_v41  ;;  %v2415_v38 = vmul.f32 %v3482_v44, %v4739_v3 }
 0x512   :  { %v2416_v52 = vmul.f32 %v3482_v44, %v4743_v29  ;;  %v2417_v10 = vmul.f32 %v3482_v44, %v4747_v45  ;;  %v2418_v4 = vmul.f32 %v3482_v44, %v4755_v20  ;;  %v2419_v9 = vmul.f32 %v3482_v44, %v4759_v16 }
 0x513   :  { %v2420_v61 = vmul.f32 %v3482_v44, %v4765_v35  ;;  %v2421_v14 = vmul.f32 %v3482_v44, %v4771_v24  ;;  %v2454_v53 = vmul.f32 %v4880_v5, %v2415_v38  ;;  %v2422_v29 = vmul.f32 %v3482_v44, %v4777_v2 }
 0x514   :  { %v2455_v3 = vmul.f32 %v4880_v5, %v2416_v52  ;;  %v2456_v45 = vmul.f32 %v4880_v5, %v2417_v10  ;;  %v2457_v20 = vmul.f32 %v4880_v5, %v2418_v4  ;;  %v2423_v16 = vmul.f32 %v3482_v44, %v4783_v11 }
 0x515   :  { %v2424_v35 = vmul.f32 %v3482_v44, %v4789_v42  ;;  %v2458_v24 = vmul.f32 %v4880_v5, %v2419_v9  ;;  %v2425_v19 = vmul.f32 %v3482_v44, %v4795_v43  ;;  %v2426_v49 = vmul.f32 %v3482_v44, %v4801_v23 }
 0x516   :  { %v2427_v2 = vmul.f32 %v3482_v44, %v4807_v34  ;;  %v2459_v22 = vmul.f32 %v4880_v5, %v2420_v61  ;;  %v2428_v15 = vmul.f32 %v3482_v44, %v4813_v36  ;;  %v2460_v18 = vmul.f32 %v4880_v5, %v2421_v14 }
 0x517   :  { %v2493_v21 = vadd.f32 %v4893_v50, %v2454_v53  ;;  %v2494_v11 = vadd.f32 %v4893_v50, %v2455_v3  ;;  %v2429_v42 = vmul.f32 %v3482_v44, %v4819_v7  ;;  %v2461_v51 = vmul.f32 %v4880_v5, %v2422_v29 }
 0x518   :  { %v2495_v43 = vadd.f32 %v4893_v50, %v2456_v45  ;;  %v2496_v23 = vadd.f32 %v4893_v50, %v2457_v20  ;;  %v2430_v34 = vmul.f32 %v3482_v44, %v4825_v40  ;;  %v2431_v33 = vmul.f32 %v3482_v44, %v4831_v28 }
 0x519   :  { %v2462_v36 = vmul.f32 %v4880_v5, %v2423_v16  ;;  %v2497_v63 = vadd.f32 %v4893_v50, %v2458_v24  ;;  %v2432_v27 = vmul.f32 %v3482_v44, %v4837_v32  ;;  %v4915_v37 = vmul.f32 0.0, %v3482_v44 }
 0x51a   :  { %v2463_v7 = vmul.f32 %v4880_v5, %v2424_v35  ;;  %v2498_v8 = vadd.f32 %v4893_v50, %v2459_v22  ;;  %v2464_v41 = vmul.f32 %v4880_v5, %v2425_v19  ;;  %v2499_v58 = vadd.f32 %v4893_v50, %v2460_v18 }
 0x51b   :  { %v2839_v13 = vmul.f32 -1.442695, %v2493_v21  ;;  %v2840_v40 = vmul.f32 -1.442695, %v2494_v11  ;;  %v2465_v28 = vmul.f32 %v4880_v5, %v2426_v49  ;;  %v2500_v31 = vadd.f32 %v4893_v50, %v2461_v51 }
 0x51c   :  { %v2841_v56 = vmul.f32 -1.442695, %v2495_v43  ;;  %v2842_v17 = vmul.f32 -1.442695, %v2496_v23  ;;  %v2466_v32 = vmul.f32 %v4880_v5, %v2427_v2  ;;  %v2501_v26 = vadd.f32 %v4893_v50, %v2462_v36 }
 0x51d   :  { %3483 = vpow2.f32 %v2839_v13  ;;  %v2843_v59 = vmul.f32 -1.442695, %v2497_v63  ;;  %v2467_v30 = vmul.f32 %v4880_v5, %v2428_v15  ;;  %v2502_v57 = vadd.f32 %v4893_v50, %v2463_v7 }
 0x51e   :  { %3485 = vpow2.f32 %v2840_v40  ;;  %v2844_v46 = vmul.f32 -1.442695, %v2498_v8  ;;  %v2468_v1 = vmul.f32 %v4880_v5, %v2429_v42  ;;  %v2503_v0 = vadd.f32 %v4893_v50, %v2464_v41 }
 0x51f   :  { %3487 = vpow2.f32 %v2841_v56  ;;  %v2845_v39 = vmul.f32 -1.442695, %v2499_v58  ;;  %v2469_v60 = vmul.f32 %v4880_v5, %v2430_v34  ;;  %v2504_v55 = vadd.f32 %v4893_v50, %v2465_v28 }
 0x520   :  { %3489 = vpow2.f32 %v2842_v17  ;;  %v2846_v44 = vmul.f32 -1.442695, %v2500_v31  ;;  %v2470_v38 = vmul.f32 %v4880_v5, %v2431_v33  ;;  %v2505_v52 = vadd.f32 %v4893_v50, %v2466_v32 }
 0x521   :  { %3491 = vpow2.f32 %v2843_v59  ;;  %v2847_v10 = vmul.f32 -1.442695, %v2501_v26  ;;  %v2471_v4 = vmul.f32 %v4880_v5, %v2432_v27  ;;  %v2506_v9 = vadd.f32 %v4893_v50, %v2467_v30 }
 0x522   :  { %3493 = vpow2.f32 %v2844_v46  ;;  %v2848_v61 = vmul.f32 -1.442695, %v2502_v57  ;;  %v2472_v14 = vmul.f32 %v4880_v5, %v4859_v62  ;;  %v2507_v53 = vadd.f32 %v4893_v50, %v2468_v1 }
 0x523   :  { %3495 = vpow2.f32 %v2845_v39  ;;  %v2849_v3 = vmul.f32 -1.442695, %v2503_v0  ;;  %v2473_v29 = vmul.f32 %v4880_v5, %v4861_v6  ;;  %v2508_v45 = vadd.f32 %v4893_v50, %v2469_v60 }
 0x524   :  { %3497 = vpow2.f32 %v2846_v44  ;;  %v2850_v20 = vmul.f32 -1.442695, %v2504_v55  ;;  %v2474_v16 = vmul.f32 %v4880_v5, %v4863_v47  ;;  %v2509_v35 = vadd.f32 %v4893_v50, %v2470_v38 }
 0x525   :  { %3499 = vpow2.f32 %v2847_v10  ;;  %v2851_v24 = vmul.f32 -1.442695, %v2505_v52  ;;  %v2475_v62 = vmul.f32 %v4880_v5, %v4865_v54  ;;  %v2510_v19 = vadd.f32 %v4893_v50, %v2471_v4 }
 0x526   :  { %3501 = vpow2.f32 %v2848_v61  ;;  %v2852_v49 = vmul.f32 -1.442695, %v2506_v9  ;;  %v2476_v6 = vmul.f32 %v4880_v5, %v4867_v25  ;;  %v2511_v2 = vadd.f32 %v4893_v50, %v2472_v14 }
 0x527   :  { %3503 = vpow2.f32 %v2849_v3  ;;  %v2853_v22 = vmul.f32 -1.442695, %v2507_v53  ;;  %v2477_v47 = vmul.f32 %v4880_v5, %v4869_v48  ;;  %v2512_v15 = vadd.f32 %v4893_v50, %v2473_v29 }
 0x528   :  { %3505 = vpow2.f32 %v2850_v20  ;;  %v2854_v18 = vmul.f32 -1.442695, %v2508_v45  ;;  %v2478_v54 = vmul.f32 %v4880_v5, %v4871_v12  ;;  %v2513_v21 = vadd.f32 %v4893_v50, %v2474_v16 }
 0x529   :  { %3507 = vpow2.f32 %v2851_v24  ;;  %v2855_v11 = vmul.f32 -1.442695, %v2509_v35  ;;  %v2479_v25 = vmul.f32 %v4880_v5, %v4915_v37  ;;  %v2514_v51 = vadd.f32 %v4893_v50, %v2475_v62 }
 0x52a   :  { %v3484_v42 = vpop.eup %3483  ;;  %3509 = vpow2.f32 %v2852_v49  ;;  %v2856_v43 = vmul.f32 -1.442695, %v2510_v19  ;;  %v2515_v23 = vadd.f32 %v4893_v50, %v2476_v6  ;;  %v2857_v34 = vmul.f32 -1.442695, %v2511_v2 }
 0x52b   :  { %v3486_v48 = vpop.eup %3485  ;;  %3511 = vpow2.f32 %v2853_v22  ;;  %v2516_v12 = vadd.f32 %v4893_v50, %v2477_v47  ;;  %v2858_v36 = vmul.f32 -1.442695, %v2512_v15  ;;  %v2517_v27 = vadd.f32 %v4893_v50, %v2478_v54 }
 0x52c   :  { %v3488_v33 = vpop.eup %3487  ;;  %3513 = vpow2.f32 %v2854_v18  ;;  %v2859_v7 = vmul.f32 -1.442695, %v2513_v21  ;;  %v2518_v37 = vadd.f32 %v4893_v50, %v2479_v25  ;;  %v2860_v8 = vmul.f32 -1.442695, %v2514_v51 }
 0x52d   :  { %v3490_v63 = vpop.eup %3489  ;;  %3515 = vpow2.f32 %v2855_v11  ;;  %v2861_v58 = vmul.f32 -1.442695, %v2515_v23  ;;  %v2862_v40 = vmul.f32 -1.442695, %v2516_v12  ;;  %v2863_v31 = vmul.f32 -1.442695, %v2517_v27 }
 0x52e   :  { %v3492_v5 = vpop.eup %3491  ;;  %3517 = vpow2.f32 %v2856_v43  ;;  %v2864_v17 = vmul.f32 -1.442695, %v2518_v37  ;;  %v2621_v26 = vadd.f32 1.0, %v3484_v42  ;;  %v2622_v50 = vadd.f32 1.0, %v3486_v48 }
 0x52f   :  { %v3494_v41 = vpop.eup %3493  ;;  %3519 = vpow2.f32 %v2857_v34  ;;  %v2623_v57 = vadd.f32 1.0, %v3488_v33  ;;  %v2624_v1 = vadd.f32 1.0, %v3490_v63  ;;  %v2625_v39 = vadd.f32 1.0, %v3492_v5 }
 0x530   :  { %v3496_v13 = vpop.eup %3495  ;;  %3521 = vpow2.f32 %v2858_v36  ;;  %v2626_v55 = vadd.f32 1.0, %v3494_v41 }
 0x531   :  { %v3498_v28 = vpop.eup %3497  ;;  %3523 = vpow2.f32 %v2859_v7  ;;  %v2627_v38 = vadd.f32 1.0, %v3496_v13 }
 0x532   :  { %v3500_v56 = vpop.eup %3499  ;;  %3525 = vpow2.f32 %v2860_v8  ;;  %v2628_v10 = vadd.f32 1.0, %v3498_v28 }
 0x533   :  { %v3502_v32 = vpop.eup %3501  ;;  %3527 = vpow2.f32 %v2861_v58  ;;  %v2629_v9 = vadd.f32 1.0, %v3500_v56 }
 0x534   :  { %v3504_v59 = vpop.eup %3503  ;;  %3529 = vpow2.f32 %v2862_v40  ;;  %v2630_v14 = vadd.f32 1.0, %v3502_v32 }
 0x535   :  { %v3506_v30 = vpop.eup %3505  ;;  %3531 = vpow2.f32 %v2863_v31  ;;  %v2631_v3 = vadd.f32 1.0, %v3504_v59 }
 0x536   :  { %v3508_v46 = vpop.eup %3507  ;;  %3533 = vpow2.f32 %v2864_v17  ;;  %v2632_v45 = vadd.f32 1.0, %v3506_v30 }
 0x537   :  { %v3510_v0 = vpop.eup %3509  ;;  %3535 = vrcp.f32 %v2621_v26  ;;  %v2633_v16 = vadd.f32 1.0, %v3508_v46 }
 0x538   :  { %v3512_v60 = vpop.eup %3511  ;;  %3537 = vrcp.f32 %v2622_v50  ;;  %v2634_v24 = vadd.f32 1.0, %v3510_v0 }
 0x539   :  { %v3514_v44 = vpop.eup %3513  ;;  %3539 = vrcp.f32 %v2623_v57  ;;  %v2635_v19 = vadd.f32 1.0, %v3512_v60 }
 0x53a   :  { %v3516_v52 = vpop.eup %3515  ;;  %3541 = vrcp.f32 %v2624_v1  ;;  %v2636_v6 = vadd.f32 1.0, %v3514_v44 }
 0x53b   :  { %v3518_v4 = vpop.eup %3517  ;;  %3543 = vrcp.f32 %v2625_v39  ;;  %v2637_v22 = vadd.f32 1.0, %v3516_v52 }
 0x53c   :  { %v3520_v61 = vpop.eup %3519  ;;  %3545 = vrcp.f32 %v2626_v55  ;;  %v2638_v15 = vadd.f32 1.0, %v3518_v4 }
 0x53d   :  { %v3522_v53 = vpop.eup %3521  ;;  %3547 = vrcp.f32 %v2627_v38  ;;  %v2639_v54 = vadd.f32 1.0, %v3520_v61 }
 0x53e   :  { %v3524_v29 = vpop.eup %3523  ;;  %3549 = vrcp.f32 %v2628_v10  ;;  %v2640_v11 = vadd.f32 1.0, %v3522_v53 }
 0x53f   :  { %v3526_v20 = vpop.eup %3525  ;;  %3551 = vrcp.f32 %v2629_v9  ;;  %v2641_v25 = vadd.f32 1.0, %v3524_v29 }
 0x540   :  { %v3528_v35 = vpop.eup %3527  ;;  %3553 = vrcp.f32 %v2630_v14  ;;  %v2642_v43 = vadd.f32 1.0, %v3526_v20 }
 0x541   :  { %v3530_v62 = vpop.eup %3529  ;;  %3555 = vrcp.f32 %v2631_v3  ;;  %v2643_v23 = vadd.f32 1.0, %v3528_v35 }
 0x542   :  { %v3532_v49 = vpop.eup %3531  ;;  %3557 = vrcp.f32 %v2632_v45  ;;  %v2644_v33 = vadd.f32 1.0, %v3530_v62 }
 0x543   :  { %v3534_v2 = vpop.eup %3533  ;;  %3559 = vrcp.f32 %v2633_v16  ;;  %v2645_v36 = vadd.f32 1.0, %v3532_v49 }
 0x544   :  { %v3536_v47 = vpop.eup %3535  ;;  %3561 = vrcp.f32 %v2634_v24  ;;  %v2646_v27 = vadd.f32 1.0, %v3534_v2 }
 0x545   :  { %v3538_v18 = vpop.eup %3537  ;;  %3563 = vrcp.f32 %v2635_v19  ;;  %2717 = vst [vmem:[%s5073_s14] sm:$0xff] %v3536_v47 }
 0x546   :  { %v3540_v21 = vpop.eup %3539  ;;  %3565 = vrcp.f32 %v2636_v6  ;;  %2718 = vst [vmem:[%s5073_s14 + $0x8] sm:$0xff] %v3538_v18 }
 0x547   :  { %v3542_v42 = vpop.eup %3541  ;;  %3567 = vrcp.f32 %v2637_v22  ;;  %2719 = vst [vmem:[%s5073_s14 + $0x10] sm:$0xff] %v3540_v21 }
 0x548   :  { %v3544_v51 = vpop.eup %3543  ;;  %3569 = vrcp.f32 %v2638_v15  ;;  %2720 = vst [vmem:[%s5073_s14 + $0x18] sm:$0xff] %v3542_v42 }
 0x549   :  { %v3546_v48 = vpop.eup %3545  ;;  %3571 = vrcp.f32 %v2639_v54  ;;  %2721 = vst [vmem:[%s5073_s14 + $0x20] sm:$0xff] %v3544_v51 }
 0x54a   :  { %v3548_v34 = vpop.eup %3547  ;;  %3573 = vrcp.f32 %v2640_v11  ;;  %2722 = vst [vmem:[%s5073_s14 + $0x28] sm:$0xff] %v3546_v48 }
 0x54b   :  { %v3550_v12 = vpop.eup %3549  ;;  %3575 = vrcp.f32 %v2641_v25  ;;  %2723 = vst [vmem:[%s5073_s14 + $0x30] sm:$0xff] %v3548_v34 }
 0x54c   :  { %v3552_v63 = vpop.eup %3551  ;;  %3577 = vrcp.f32 %v2642_v43  ;;  %2724 = vst [vmem:[%s5073_s14 + $0x38] sm:$0xff] %v3550_v12 }
 0x54d   :  { %v3554_v7 = vpop.eup %3553  ;;  %3579 = vrcp.f32 %v2643_v23  ;;  %2725 = vst [vmem:[%s5073_s14 + $0x40] sm:$0xff] %v3552_v63 }
 0x54e   :  { %v3556_v5 = vpop.eup %3555  ;;  %3581 = vrcp.f32 %v2644_v33  ;;  %2726 = vst [vmem:[%s5073_s14 + $0x48] sm:$0xff] %v3554_v7 }
 0x54f   :  { %v3558_v37 = vpop.eup %3557  ;;  %3583 = vrcp.f32 %v2645_v36  ;;  %2727 = vst [vmem:[%s5073_s14 + $0x50] sm:$0xff] %v3556_v5 }
 0x550   :  { %v3560_v8 = vpop.eup %3559  ;;  %3585 = vrcp.f32 %v2646_v27  ;;  %2728 = vst [vmem:[%s5073_s14 + $0x58] sm:$0xff] %v3558_v37 }
 0x551   :  { %v3562_v41 = vpop.eup %3561  ;;  %2729 = vst [vmem:[%s5073_s14 + $0x60] sm:$0xff] %v3560_v8 }
 0x552   :  { %v3564_v58 = vpop.eup %3563  ;;  %2730 = vst [vmem:[%s5073_s14 + $0x68] sm:$0xff] %v3562_v41 }
 0x553   :  { %v3566_v13 = vpop.eup %3565  ;;  %2731 = vst [vmem:[%s5073_s14 + $0x70] sm:$0xff] %v3564_v58 }
 0x554   :  { %v3568_v40 = vpop.eup %3567  ;;  %2732 = vst [vmem:[%s5073_s14 + $0x78] sm:$0xff] %v3566_v13 }
 0x555   :  { %v3570_v28 = vpop.eup %3569  ;;  %2733 = vst [vmem:[%s5073_s14 + $0x80] sm:$0xff] %v3568_v40 }
 0x556   :  { %v3572_v31 = vpop.eup %3571  ;;  %2734 = vst [vmem:[%s5073_s14 + $0x88] sm:$0xff] %v3570_v28 }
 0x557   :  { %v3574_v56 = vpop.eup %3573  ;;  %2735 = vst [vmem:[%s5073_s14 + $0x90] sm:$0xff] %v3572_v31 }
 0x558   :  { %v3576_v17 = vpop.eup %3575  ;;  %2736 = vst [vmem:[%s5073_s14 + $0x98] sm:$0xff] %v3574_v56 }
 0x559   :  { %v3578_v32 = vpop.eup %3577  ;;  %2737 = vst [vmem:[%s5073_s14 + $0xa0] sm:$0xff] %v3576_v17 }
 0x55a   :  { %v3580_v26 = vpop.eup %3579  ;;  %2738 = vst [vmem:[%s5073_s14 + $0xa8] sm:$0xff] %v3578_v32 }
 0x55b   :  { %v3582_v59 = vpop.eup %3581  ;;  %2739 = vst [vmem:[%s5073_s14 + $0xb0] sm:$0xff] %v3580_v26 }
 0x55c   :  { %v3584_v50 = vpop.eup %3583  ;;  %2740 = vst [vmem:[%s5073_s14 + $0xb8] sm:$0xff] %v3582_v59 }
 0x55d   :  { %v3586_v30 = vpop.eup %3585  ;;  %2741 = vst [vmem:[%s5073_s14 + $0xc0] sm:$0xff] %v3584_v50 }
 0x55e   :  { %2742 = vst [vmem:[%s5073_s14 + $0xc8] sm:$0xff] %v3586_v30  ;;  %2743 = vst [vmem:[%s5073_s14 + $0xd0] sm:$0xff] %v3586_v30 }
 0x55f   :  { %2744 = vst [vmem:[%s5073_s14 + $0xd8] sm:$0xff] %v3586_v30  ;;  %2745 = vst [vmem:[%s5073_s14 + $0xe0] sm:$0xff] %v3586_v30 }
 0x560   :  { %2746 = vst [vmem:[%s5073_s14 + $0xe8] sm:$0xff] %v3586_v30  ;;  %2747 = vst [vmem:[%s5073_s14 + $0xf0] sm:$0xff] %v3586_v30 }
 0x561   :  { %2748 = vst [vmem:[%s5073_s14 + $0xf8] sm:$0xff] %v3586_v30 }

</bundles_post_ra>
